<compile_context>
chip_gen: v6e
topology: v6e:2x2x1
jax: 0.10.0
libtpu: 0.0.40
codegen_flags: <defaults>
</compile_context>

<pallas_src>
import functools
import math

import jax
import jax.numpy as jnp
from jax.experimental import pallas as pl
from jax.experimental.pallas import tpu as pltpu

_MIB = 1024 * 1024


def _layer_norm(v, gamma, beta, eps=1e-5):
    # PyTorch nn.LayerNorm: biased variance, eps inside sqrt. Keep in f32.
    mu = jnp.mean(v, axis=-1, keepdims=True)
    var = jnp.mean((v - mu) ** 2, axis=-1, keepdims=True)
    return (v - mu) * jax.lax.rsqrt(var + eps) * gamma + beta


def _gelu_tanh(x):
    # tanh approximation (EUP); |diff| vs exact erf GELU ~1e-3.
    c = 0.7978845608028654  # sqrt(2/pi)
    return 0.5 * x * (1.0 + jnp.tanh(c * (x + 0.044715 * x * x * x)))


def _gelu_exact(x):
    # nn.GELU() default = exact erf formulation (used by the pure-JAX reference).
    return 0.5 * x * (1.0 + jax.lax.erf(x * 0.7071067811865476))


def tlayer_kernel(x_ref, wq_ref, wkv_ref, wo_ref,
                  w1_ref, b1_ref, w2_ref, b2_ref,
                  g1_ref, be1_ref, g2_ref, be2_ref,
                  o_ref, kv_ref, *, num_heads, q_block):
    S, H = x_ref.shape[1], x_ref.shape[2]
    Tq = q_block
    nh = num_heads
    hd = H // nh

    g1, be1 = g1_ref[...], be1_ref[...]                    # (1, H) f32
    g2, be2 = g2_ref[...], be2_ref[...]                    # (1, H) f32

    # ---- K|V cache: fill once per batch row (q grid axis is "arbitrary") ----
    @pl.when(pl.program_id(1) == 0)
    def _():
        x_full = x_ref[0].astype(jnp.float32)              # (S, H)
        nx_full = _layer_norm(x_full, g1, be1).astype(jnp.bfloat16)
        kv_ref[...] = jnp.dot(nx_full, wkv_ref[...],
                              preferred_element_type=jnp.float32
                              ).astype(jnp.bfloat16)       # (S, 2H) bf16

    # ---- current query tile ----
    q_start = pl.multiple_of(pl.program_id(1) * Tq, Tq)
    x_rows = x_ref[0, pl.ds(q_start, Tq), :].astype(jnp.float32)   # (Tq, H) f32
    nx_rows = _layer_norm(x_rows, g1, be1).astype(jnp.bfloat16)

    # 1/sqrt(hd) scaling is folded into wq on the host (pack_params).
    q = jnp.dot(nx_rows, wq_ref[...],
                preferred_element_type=jnp.float32).astype(jnp.bfloat16)  # (Tq, H)

    kv = kv_ref[...]                                       # (S, 2H) bf16
    k = kv[:, :H]                                          # lane-aligned static slices
    v = kv[:, H:]

    # ---- head-batched attention, operands kept in bf16 ----
    qh = q.reshape(Tq, nh, hd).transpose(1, 0, 2)          # (nh, Tq, hd) bf16
    kh = k.reshape(S, nh, hd).transpose(1, 0, 2)           # (nh, S, hd)  bf16
    vh = v.reshape(S, nh, hd).transpose(1, 0, 2)           # (nh, S, hd)  bf16

    # TODO(synk): for very large S on v7x (64 MiB VMEM), switch to a KV-tiled
    # online-softmax inner loop instead of dense (nh, Tq, S) f32 scores.
    scores = jnp.einsum("hqd,hkd->hqk", qh, kh,
                        preferred_element_type=jnp.float32)  # (nh, Tq, S) f32
    scores = jnp.clip(scores, -10000.0, 10000.0)             # matches torch.clamp
    scores = scores - jnp.max(scores, axis=-1, keepdims=True)
    p = jnp.exp(scores)
    attn = (p * pl.reciprocal(jnp.sum(p, axis=-1, keepdims=True),
                              approx=True)).astype(jnp.bfloat16)

    ctx = jnp.einsum("hqk,hkd->hqd", attn, vh,
                     preferred_element_type=jnp.float32)   # (nh, Tq, hd) f32
    context = ctx.transpose(1, 0, 2).reshape(Tq, H).astype(jnp.bfloat16)

    attn_out = jnp.dot(context, wo_ref[...],
                       preferred_element_type=jnp.float32)  # (Tq, H) f32

    x1 = x_rows + attn_out                                  # residual 1 (f32)

    # ---- sublayer 2: feed-forward on norm2(x1) ----
    # TODO(synk): for FF >= 4H on v7x, tile w1/w2 over FF chunks (extra grid
    # axis or pltpu.emit_pipeline) instead of holding them fully resident.
    nx2 = _layer_norm(x1, g2, be2).astype(jnp.bfloat16)
    hdn = jnp.dot(nx2, w1_ref[...],
                  preferred_element_type=jnp.float32) + b1_ref[...]
    hdn = _gelu_tanh(hdn).astype(jnp.bfloat16)
    ff = jnp.dot(hdn, w2_ref[...],
                 preferred_element_type=jnp.float32) + b2_ref[...]

    o_ref[0] = (x1 + ff).astype(o_ref.dtype)               # residual 2


def pack_params(params, num_heads):
    """One-time host-side weight prep: bf16 casts, K|V fusion, scale fold."""
    H = params["wq"].shape[0]
    hd = H // num_heads
    scaling = float(hd) ** -0.5
    cdt = jnp.bfloat16
    return {
        "wq": (params["wq"] * scaling).astype(cdt),   # 1/sqrt(hd) folded in
        "wkv": jnp.concatenate([params["wk"], params["wv"]], axis=1).astype(cdt),
        "wo": params["wo"].astype(cdt),
        "w1": params["w1"].astype(cdt),
        "b1": params["b1"].astype(jnp.float32),
        "w2": params["w2"].astype(cdt),
        "b2": params["b2"].astype(jnp.float32),
        "g1": params["g1"].astype(jnp.float32),
        "be1": params["be1"].astype(jnp.float32),
        "g2": params["g2"].astype(jnp.float32),
        "be2": params["be2"].astype(jnp.float32),
    }


def _vmem_budget():
    """Physical VMEM minus headroom (generation-aware; v5e/v6e 128 MiB, v7x 64)."""
    phys = 64 * _MIB
    try:
        info = pltpu.get_tpu_info()
        phys = int(getattr(info, "vmem_capacity_bytes", phys))
    except Exception:
        pass
    headroom = 12 * _MIB if phys <= 64 * _MIB else 16 * _MIB
    return max(phys - headroom, 32 * _MIB)


def _pick_q_block(S, num_heads, vmem_budget):
    """Sublane/MXU-friendly query tile; clamp so (nh,Tq,S) f32 scores fit."""
    if S <= 512:
        return S
    score_budget = vmem_budget // 4
    cands = [c for c in (512, 256, 128, 64, 32, 16, 8) if S % c == 0]
    if not cands:
        cands = [c for c in range(min(S, 512), 7, -8) if S % c == 0] or [S]
    for cand in cands:
        if num_heads * cand * S * 4 <= score_budget:
            return cand
    return cands[-1]


def _invariant_spec(shape):
    """BlockSpec for a grid-invariant (weight/bias) input: single-buffered."""
    n = len(shape)
    idx = lambda b, q, _n=n: (0,) * _n
    try:
        return pl.BlockSpec(shape, idx, pipeline_mode=pl.Buffered(1))
    except Exception:  # older jax without pipeline_mode support
        return pl.BlockSpec(shape, idx)


def tlayer_forward(x, packed, num_heads, *, q_block=None):
    B, S, H = x.shape
    FF = packed["w1"].shape[1]
    assert H % num_heads == 0, "hidden_size must be divisible by num_heads"
    hd = H // num_heads

    vmem_cap = _vmem_budget()
    if q_block is None:
        q_block = _pick_q_block(S, num_heads, vmem_cap)
    assert S % q_block == 0, "seq_len must be divisible by q_block"
    assert q_block == S or q_block % 8 == 0, "q_block must be sublane-aligned"
    n_q = S // q_block

    in_specs = [
        pl.BlockSpec((1, S, H), lambda b, q: (b, 0, 0)),   # x (full row: KV + tile)
        _invariant_spec((H, H)),                           # W_Q (pre-scaled)
        _invariant_spec((H, 2 * H)),                       # W_K | W_V fused
        _invariant_spec((H, H)),                           # W_O
        _invariant_spec((H, FF)), _invariant_spec((1, FF)),  # linear1: W1, b1
        _invariant_spec((FF, H)), _invariant_spec((1, H)),   # linear2: W2, b2
        _invariant_spec((1, H)), _invariant_spec((1, H)),    # norm1: gamma, beta
        _invariant_spec((1, H)), _invariant_spec((1, H)),    # norm2: gamma, beta
    ]
    out_specs = pl.BlockSpec((1, q_block, H), lambda b, q: (b, q, 0))

    # ---- cost estimate (advisory); KV projection counted once per batch row ----
    flops = int(
        B * 2 * S * H * (2 * H)                        # fused K|V projection (cached)
        + B * n_q * (2 * q_block * H * H               # Q projection
                     + 2 * num_heads * q_block * S * hd * 2   # QK^T + attn@V
                     + 2 * q_block * H * H             # output projection
                     + 2 * q_block * H * FF * 2))      # FFN
    transcendentals = int(B * n_q * (num_heads * q_block * S + q_block * FF))
    weight_bytes = 2 * (2 * H * H + H * 2 * H + 2 * H * FF) + 4 * (FF + 5 * H)
    bytes_accessed = int(4 * B * S * H * 2 + weight_bytes)
    cost = pl.CostEstimate(flops=flops, transcendentals=transcendentals,
                           bytes_accessed=bytes_accessed)

    # ---- VMEM need: single-buffered weights + double-buffered x/out +
    #      KV cache scratch + per-step activations (no blanket 2x) ----
    kv_bytes = 2 * S * 2 * H
    io_bytes = 2 * 4 * S * H + 2 * 4 * q_block * H
    act_bytes = (2 * S * H                              # nx_full bf16 (step 0)
                 + 4 * num_heads * q_block * S * 2      # scores + exp (f32)
                 + 2 * num_heads * q_block * S          # attn (bf16)
                 + 4 * q_block * H * 4                  # q/ctx/x1/attn_out
                 + 6 * q_block * FF)                    # FFN hidden f32 + bf16
    need = weight_bytes + kv_bytes + io_bytes + act_bytes
    vmem_limit = int(min(max(int(need * 1.25), 32 * _MIB), vmem_cap))

    kern = functools.partial(tlayer_kernel, num_heads=num_heads, q_block=q_block)
    return pl.pallas_call(
        kern,
        out_shape=jax.ShapeDtypeStruct((B, S, H), x.dtype),
        grid_spec=pltpu.PrefetchScalarGridSpec(
            num_scalar_prefetch=0,
            grid=(B, n_q),
            in_specs=in_specs,
            out_specs=out_specs,
            scratch_shapes=[pltpu.VMEM((S, 2 * H), jnp.bfloat16)],  # K|V cache
        ),
        compiler_params=pltpu.CompilerParams(
            # q axis carries the KV-cache scratch -> must be "arbitrary";
            # megacore (v7x) shards on the batch axis only.
            dimension_semantics=("parallel", "arbitrary"),
            vmem_limit_bytes=vmem_limit),
        cost_estimate=cost,
    )(x, packed["wq"], packed["wkv"], packed["wo"],
      packed["w1"], packed["b1"], packed["w2"], packed["b2"],
      packed["g1"], packed["be1"], packed["g2"], packed["be2"])


def tlayer_reference(x, params, num_heads):
    """Pure-JAX f32 reference mirroring the PyTorch forward (eval mode)."""
    B, S, H = x.shape
    hd = H // num_heads
    scaling = hd ** (-0.5)

    nx = _layer_norm(x, params["g1"][0], params["be1"][0])
    Q = nx @ params["wq"]
    K = nx @ params["wk"]
    V = nx @ params["wv"]
    Q = Q.reshape(B, S, num_heads, hd).transpose(0, 2, 1, 3)
    K = K.reshape(B, S, num_heads, hd).transpose(0, 2, 1, 3)
    V = V.reshape(B, S, num_heads, hd).transpose(0, 2, 1, 3)
    scores = jnp.clip(jnp.einsum("bhqd,bhkd->bhqk", Q, K) * scaling,
                      -10000.0, 10000.0)
    attn = jax.nn.softmax(scores, axis=-1)
    ctx = jnp.einsum("bhqk,bhkd->bhqd", attn, V).transpose(0, 2, 1, 3).reshape(B, S, H)
    x = x + ctx @ params["wo"]

    nx2 = _layer_norm(x, params["g2"][0], params["be2"][0])
    h = _gelu_exact(nx2 @ params["w1"] + params["b1"][0])
    return x + (h @ params["w2"] + params["b2"][0])


def init_params(key, hidden_size, ff_size):
    ks = jax.random.split(key, 6)
    xav = math.sqrt(6.0 / (hidden_size + ff_size))
    return {
        # attention projections: randn * 0.02, applied as x @ W
        "wq": 0.02 * jax.random.normal(ks[0], (hidden_size, hidden_size), jnp.float32),
        "wk": 0.02 * jax.random.normal(ks[1], (hidden_size, hidden_size), jnp.float32),
        "wv": 0.02 * jax.random.normal(ks[2], (hidden_size, hidden_size), jnp.float32),
        "wo": 0.02 * jax.random.normal(ks[3], (hidden_size, hidden_size), jnp.float32),
        # feed-forward (xavier_uniform weights, zero biases); stored pre-transposed
        "w1": jax.random.uniform(ks[4], (hidden_size, ff_size), jnp.float32, -xav, xav),
        "b1": jnp.zeros((1, ff_size), jnp.float32),
        "w2": jax.random.uniform(ks[5], (ff_size, hidden_size), jnp.float32, -xav, xav),
        "b2": jnp.zeros((1, hidden_size), jnp.float32),
        # LayerNorm affine params (PyTorch default init)
        "g1": jnp.ones((1, hidden_size), jnp.float32),
        "be1": jnp.zeros((1, hidden_size), jnp.float32),
        "g2": jnp.ones((1, hidden_size), jnp.float32),
        "be2": jnp.zeros((1, hidden_size), jnp.float32),
    }


if __name__ == "__main__":
    # TODO(synk): dropout is identity (eval mode); mask=None path only.
    # head_size = 128 and H/FF multiples of 128 keep every matmul / store
    # lane-aligned (MXU-friendly, unmasked vst).
    B, S, H, NH, FF = 2, 16, 256, 2, 512
    key = jax.random.PRNGKey(0)
    kx, kp = jax.random.split(key)
    x = jax.random.normal(kx, (B, S, H), jnp.float32)
    params = init_params(kp, H, FF)
    packed = pack_params(params, NH)   # one-time host-side weight packing

    ref = tlayer_reference(x, params, NH)

    # Full-sequence-per-step path (n_q == 1).
    out = jax.block_until_ready(tlayer_forward(x, packed, NH))
    assert out.shape == (B, S, H)
    # bf16 MXU operands, tanh-GELU, approx softmax reciprocal vs. f32 reference.
    assert jnp.allclose(out, ref, rtol=5e-2, atol=5e-2), (
        f"max abs err {jnp.max(jnp.abs(out - ref))}")

    # Query-tiled path (exercises the per-row KV cache across q tiles).
    out_t = jax.block_until_ready(tlayer_forward(x, packed, NH, q_block=8))
    assert jnp.allclose(out_t, ref, rtol=5e-2, atol=5e-2), (
        f"max abs err (tiled) {jnp.max(jnp.abs(out_t - ref))}")

    print("KERNEL_OK")
</pallas_src>

<mosaic_0001>
module attributes {stable_mosaic.version = 11 : i64} {
  func.func @tlayer_kernel(%arg0: i32, %arg1: i32, %arg2: memref<1x16x256xf32, #tpu.memory_space<vmem>>, %arg3: memref<256x256xbf16, #tpu.memory_space<vmem>>, %arg4: memref<256x512xbf16, #tpu.memory_space<vmem>>, %arg5: memref<256x256xbf16, #tpu.memory_space<vmem>>, %arg6: memref<256x512xbf16, #tpu.memory_space<vmem>>, %arg7: memref<1x512xf32, #tpu.memory_space<vmem>>, %arg8: memref<512x256xbf16, #tpu.memory_space<vmem>>, %arg9: memref<1x256xf32, #tpu.memory_space<vmem>>, %arg10: memref<1x256xf32, #tpu.memory_space<vmem>>, %arg11: memref<1x256xf32, #tpu.memory_space<vmem>>, %arg12: memref<1x256xf32, #tpu.memory_space<vmem>>, %arg13: memref<1x256xf32, #tpu.memory_space<vmem>>, %arg14: memref<1x16x256xf32, #tpu.memory_space<vmem>>, %arg15: memref<16x512xbf16, #tpu.memory_space<vmem>>) attributes {dimension_semantics = [#tpu.dimension_semantics<parallel>, #tpu.dimension_semantics<arbitrary>], iteration_bounds = array<i64: 2, 1>, scalar_prefetch = 0 : i64, scratch_operands = 1 : i64, tpu.core_type = #tpu.core_type<tc>, window_params = [{transform_indices = @transform_0, window_bounds = array<i64: 1, 16, 256>}, {pipeline_mode = #tpu.pipeline_mode<synchronous>, transform_indices = @transform_1, window_bounds = array<i64: 256, 256>}, {pipeline_mode = #tpu.pipeline_mode<synchronous>, transform_indices = @transform_2, window_bounds = array<i64: 256, 512>}, {pipeline_mode = #tpu.pipeline_mode<synchronous>, transform_indices = @transform_3, window_bounds = array<i64: 256, 256>}, {pipeline_mode = #tpu.pipeline_mode<synchronous>, transform_indices = @transform_4, window_bounds = array<i64: 256, 512>}, {pipeline_mode = #tpu.pipeline_mode<synchronous>, transform_indices = @transform_5, window_bounds = array<i64: 1, 512>}, {pipeline_mode = #tpu.pipeline_mode<synchronous>, transform_indices = @transform_6, window_bounds = array<i64: 512, 256>}, {pipeline_mode = #tpu.pipeline_mode<synchronous>, transform_indices = @transform_7, window_bounds = array<i64: 1, 256>}, {pipeline_mode = #tpu.pipeline_mode<synchronous>, transform_indices = @transform_8, window_bounds = array<i64: 1, 256>}, {pipeline_mode = #tpu.pipeline_mode<synchronous>, transform_indices = @transform_9, window_bounds = array<i64: 1, 256>}, {pipeline_mode = #tpu.pipeline_mode<synchronous>, transform_indices = @transform_10, window_bounds = array<i64: 1, 256>}, {pipeline_mode = #tpu.pipeline_mode<synchronous>, transform_indices = @transform_11, window_bounds = array<i64: 1, 256>}, {transform_indices = @transform_12, window_bounds = array<i64: 1, 16, 256>}]} {
    %c0 = arith.constant 0 : index
    %c0_0 = arith.constant 0 : index
    %0 = vector.load %arg10[%c0, %c0_0] : memref<1x256xf32, #tpu.memory_space<vmem>>, vector<1x256xf32>
    %c0_1 = arith.constant 0 : index
    %c0_2 = arith.constant 0 : index
    %1 = vector.load %arg11[%c0_1, %c0_2] : memref<1x256xf32, #tpu.memory_space<vmem>>, vector<1x256xf32>
    %c0_3 = arith.constant 0 : index
    %c0_4 = arith.constant 0 : index
    %2 = vector.load %arg12[%c0_3, %c0_4] : memref<1x256xf32, #tpu.memory_space<vmem>>, vector<1x256xf32>
    %c0_5 = arith.constant 0 : index
    %c0_6 = arith.constant 0 : index
    %3 = vector.load %arg13[%c0_5, %c0_6] : memref<1x256xf32, #tpu.memory_space<vmem>>, vector<1x256xf32>
    %c0_i32 = arith.constant 0 : i32
    %4 = arith.cmpi eq, %arg1, %c0_i32 : i32
    %5 = arith.extui %4 : i1 to i32
    %c0_i32_7 = arith.constant 0 : i32
    %6 = arith.cmpi ne, %5, %c0_i32_7 : i32
    scf.if %6 {
      %c0_50 = arith.constant 0 : index
      %c0_51 = arith.constant 0 : index
      %c0_52 = arith.constant 0 : index
      %121 = vector.load %arg2[%c0_50, %c0_51, %c0_52] : memref<1x16x256xf32, #tpu.memory_space<vmem>>, vector<1x16x256xf32>
      %122 = vector.shape_cast %121 : vector<1x16x256xf32> to vector<16x256xf32>
      %cst_53 = arith.constant dense<0.000000e+00> : vector<16xf32>
      %123 = vector.multi_reduction <add>, %122, %cst_53 [1] : vector<16x256xf32> to vector<16xf32>
      %124 = vector.shape_cast %123 : vector<16xf32> to vector<16x1xf32>
      %cst_54 = arith.constant 2.560000e+02 : f32
      %125 = vector.broadcast %cst_54 : f32 to vector<16x1xf32>
      %126 = arith.divf %124, %125 : vector<16x1xf32>
      %127 = vector.broadcast %126 : vector<16x1xf32> to vector<16x256xf32>
      %128 = arith.subf %122, %127 : vector<16x256xf32>
      %129 = arith.mulf %128, %128 : vector<16x256xf32>
      %cst_55 = arith.constant dense<0.000000e+00> : vector<16xf32>
      %130 = vector.multi_reduction <add>, %129, %cst_55 [1] : vector<16x256xf32> to vector<16xf32>
      %131 = vector.shape_cast %130 : vector<16xf32> to vector<16x1xf32>
      %cst_56 = arith.constant 2.560000e+02 : f32
      %132 = vector.broadcast %cst_56 : f32 to vector<16x1xf32>
      %133 = arith.divf %131, %132 : vector<16x1xf32>
      %134 = vector.broadcast %126 : vector<16x1xf32> to vector<16x256xf32>
      %135 = arith.subf %122, %134 : vector<16x256xf32>
      %cst_57 = arith.constant 9.99999974E-6 : f32
      %136 = vector.broadcast %cst_57 : f32 to vector<16x1xf32>
      %137 = arith.addf %133, %136 : vector<16x1xf32>
      %138 = math.rsqrt %137 : vector<16x1xf32>
      %139 = vector.broadcast %138 : vector<16x1xf32> to vector<16x256xf32>
      %140 = arith.mulf %135, %139 : vector<16x256xf32>
      %141 = vector.broadcast %0 : vector<1x256xf32> to vector<16x256xf32>
      %142 = arith.mulf %140, %141 : vector<16x256xf32>
      %143 = vector.broadcast %1 : vector<1x256xf32> to vector<16x256xf32>
      %144 = arith.addf %142, %143 : vector<16x256xf32>
      %145 = arith.truncf %144 : vector<16x256xf32> to vector<16x256xbf16>
      %c0_58 = arith.constant 0 : index
      %c0_59 = arith.constant 0 : index
      %146 = vector.load %arg4[%c0_58, %c0_59] : memref<256x512xbf16, #tpu.memory_space<vmem>>, vector<256x512xbf16>
      %cst_60 = arith.constant dense<0.000000e+00> : vector<16x512xf32>
      %147 = tpu.matmul %145, %146, %cst_60 {dimension_numbers = #tpu.dot_dimension_numbers<[1], [0], [0], [1], [0, 0, 1, 1], [], []>} : vector<16x256xbf16>, vector<256x512xbf16>, vector<16x512xf32> -> vector<16x512xf32>
      %148 = arith.truncf %147 : vector<16x512xf32> to vector<16x512xbf16>
      %c0_61 = arith.constant 0 : index
      %c0_62 = arith.constant 0 : index
      %149 = vector.load %arg15[%c0_61, %c0_62] : memref<16x512xbf16, #tpu.memory_space<vmem>>, vector<16x512xbf16>
      tpu.vector_store %arg15[%c0_61, %c0_62], %148 {strides = array<i32>} : memref<16x512xbf16, #tpu.memory_space<vmem>>, vector<16x512xbf16>,
    } else {
    }
    %c16_i32 = arith.constant 16 : i32
    %7 = arith.muli %arg1, %c16_i32 : i32
    %8 = tpu.assume_multiple %7, 16 : i32
    %c0_8 = arith.constant 0 : index
    %9 = arith.index_cast %8 : i32 to index
    %c0_9 = arith.constant 0 : index
    %10 = vector.load %arg2[%c0_8, %9, %c0_9] : memref<1x16x256xf32, #tpu.memory_space<vmem>>, vector<1x16x256xf32>
    %11 = vector.shape_cast %10 : vector<1x16x256xf32> to vector<16x256xf32>
    %cst = arith.constant dense<0.000000e+00> : vector<16xf32>
    %12 = vector.multi_reduction <add>, %11, %cst [1] : vector<16x256xf32> to vector<16xf32>
    %13 = vector.shape_cast %12 : vector<16xf32> to vector<16x1xf32>
    %cst_10 = arith.constant 2.560000e+02 : f32
    %14 = vector.broadcast %cst_10 : f32 to vector<16x1xf32>
    %15 = arith.divf %13, %14 : vector<16x1xf32>
    %16 = vector.broadcast %15 : vector<16x1xf32> to vector<16x256xf32>
    %17 = arith.subf %11, %16 : vector<16x256xf32>
    %18 = arith.mulf %17, %17 : vector<16x256xf32>
    %cst_11 = arith.constant dense<0.000000e+00> : vector<16xf32>
    %19 = vector.multi_reduction <add>, %18, %cst_11 [1] : vector<16x256xf32> to vector<16xf32>
    %20 = vector.shape_cast %19 : vector<16xf32> to vector<16x1xf32>
    %cst_12 = arith.constant 2.560000e+02 : f32
    %21 = vector.broadcast %cst_12 : f32 to vector<16x1xf32>
    %22 = arith.divf %20, %21 : vector<16x1xf32>
    %23 = vector.broadcast %15 : vector<16x1xf32> to vector<16x256xf32>
    %24 = arith.subf %11, %23 : vector<16x256xf32>
    %cst_13 = arith.constant 9.99999974E-6 : f32
    %25 = vector.broadcast %cst_13 : f32 to vector<16x1xf32>
    %26 = arith.addf %22, %25 : vector<16x1xf32>
    %27 = math.rsqrt %26 : vector<16x1xf32>
    %28 = vector.broadcast %27 : vector<16x1xf32> to vector<16x256xf32>
    %29 = arith.mulf %24, %28 : vector<16x256xf32>
    %30 = vector.broadcast %0 : vector<1x256xf32> to vector<16x256xf32>
    %31 = arith.mulf %29, %30 : vector<16x256xf32>
    %32 = vector.broadcast %1 : vector<1x256xf32> to vector<16x256xf32>
    %33 = arith.addf %31, %32 : vector<16x256xf32>
    %34 = arith.truncf %33 : vector<16x256xf32> to vector<16x256xbf16>
    %c0_14 = arith.constant 0 : index
    %c0_15 = arith.constant 0 : index
    %35 = vector.load %arg3[%c0_14, %c0_15] : memref<256x256xbf16, #tpu.memory_space<vmem>>, vector<256x256xbf16>
    %cst_16 = arith.constant dense<0.000000e+00> : vector<16x256xf32>
    %36 = tpu.matmul %34, %35, %cst_16 {dimension_numbers = #tpu.dot_dimension_numbers<[1], [0], [0], [1], [0, 0, 1, 1], [], []>} : vector<16x256xbf16>, vector<256x256xbf16>, vector<16x256xf32> -> vector<16x256xf32>
    %37 = arith.truncf %36 : vector<16x256xf32> to vector<16x256xbf16>
    %c0_17 = arith.constant 0 : index
    %c0_18 = arith.constant 0 : index
    %38 = vector.load %arg15[%c0_17, %c0_18] : memref<16x512xbf16, #tpu.memory_space<vmem>>, vector<16x512xbf16>
    %39 = vector.extract_strided_slice %38 {offsets = [0, 0], sizes = [16, 256], strides = [1, 1]} : vector<16x512xbf16> to vector<16x256xbf16>
    %40 = vector.extract_strided_slice %38 {offsets = [0, 256], sizes = [16, 256], strides = [1, 1]} : vector<16x512xbf16> to vector<16x256xbf16>
    %41 = vector.shape_cast %37 : vector<16x256xbf16> to vector<16x2x128xbf16>
    %42 = tpu.transpose %41, [1, 0, 2] : vector<16x2x128xbf16> -> vector<2x16x128xbf16>
    %43 = vector.shape_cast %39 : vector<16x256xbf16> to vector<16x2x128xbf16>
    %44 = tpu.transpose %43, [1, 0, 2] : vector<16x2x128xbf16> -> vector<2x16x128xbf16>
    %45 = vector.shape_cast %40 : vector<16x256xbf16> to vector<16x2x128xbf16>
    %46 = tpu.transpose %45, [1, 0, 2] : vector<16x2x128xbf16> -> vector<2x16x128xbf16>
    "tpu.trace_start"() <{level = 10 : i32, message = "hqd,hkd->hqk"}> : () -> ()
    %cst_19 = arith.constant dense<0.000000e+00> : vector<2x16x16xf32>
    %47 = tpu.matmul %42, %44, %cst_19 {dimension_numbers = #tpu.dot_dimension_numbers<[2], [2], [1], [1], [0, 0, 0, 1, 1, 1], [0], [0]>} : vector<2x16x128xbf16>, vector<2x16x128xbf16>, vector<2x16x16xf32> -> vector<2x16x16xf32>
    %cst_20 = arith.constant -1.000000e+04 : f32
    %cst_21 = arith.constant 1.000000e+04 : f32
    "tpu.trace_stop"() : () -> ()
    %48 = vector.broadcast %cst_20 : f32 to vector<2x16x16xf32>
    %49 = arith.maximumf %48, %47 : vector<2x16x16xf32>
    %50 = vector.broadcast %cst_21 : f32 to vector<2x16x16xf32>
    %51 = arith.minimumf %50, %49 : vector<2x16x16xf32>
    %cst_22 = arith.constant dense<0xFF800000> : vector<2x16xf32>
    %52 = vector.multi_reduction <maximumf>, %51, %cst_22 [2] : vector<2x16x16xf32> to vector<2x16xf32>
    %53 = vector.shape_cast %52 : vector<2x16xf32> to vector<2x16x1xf32>
    %54 = vector.broadcast %53 : vector<2x16x1xf32> to vector<2x16x16xf32>
    %55 = arith.subf %51, %54 : vector<2x16x16xf32>
    %56 = math.exp %55 : vector<2x16x16xf32>
    %cst_23 = arith.constant dense<0.000000e+00> : vector<2x16xf32>
    %57 = vector.multi_reduction <add>, %56, %cst_23 [2] : vector<2x16x16xf32> to vector<2x16xf32>
    %58 = vector.shape_cast %57 : vector<2x16xf32> to vector<2x16x1xf32>
    %59 = tpu.reciprocal %58 {approx = true} : vector<2x16x1xf32> -> vector<2x16x1xf32>
    %60 = vector.broadcast %59 : vector<2x16x1xf32> to vector<2x16x16xf32>
    %61 = arith.mulf %56, %60 : vector<2x16x16xf32>
    %62 = arith.truncf %61 : vector<2x16x16xf32> to vector<2x16x16xbf16>
    "tpu.trace_start"() <{level = 10 : i32, message = "hqk,hkd->hqd"}> : () -> ()
    %cst_24 = arith.constant dense<0.000000e+00> : vector<2x16x128xf32>
    %63 = tpu.matmul %62, %46, %cst_24 {dimension_numbers = #tpu.dot_dimension_numbers<[2], [1], [1], [2], [0, 0, 0, 1, 1, 2], [0], [0]>} : vector<2x16x16xbf16>, vector<2x16x128xbf16>, vector<2x16x128xf32> -> vector<2x16x128xf32>
    "tpu.trace_stop"() : () -> ()
    %64 = tpu.transpose %63, [1, 0, 2] : vector<2x16x128xf32> -> vector<16x2x128xf32>
    %65 = vector.shape_cast %64 : vector<16x2x128xf32> to vector<16x256xf32>
    %66 = arith.truncf %65 : vector<16x256xf32> to vector<16x256xbf16>
    %c0_25 = arith.constant 0 : index
    %c0_26 = arith.constant 0 : index
    %67 = vector.load %arg5[%c0_25, %c0_26] : memref<256x256xbf16, #tpu.memory_space<vmem>>, vector<256x256xbf16>
    %cst_27 = arith.constant dense<0.000000e+00> : vector<16x256xf32>
    %68 = tpu.matmul %66, %67, %cst_27 {dimension_numbers = #tpu.dot_dimension_numbers<[1], [0], [0], [1], [0, 0, 1, 1], [], []>} : vector<16x256xbf16>, vector<256x256xbf16>, vector<16x256xf32> -> vector<16x256xf32>
    %69 = arith.addf %11, %68 : vector<16x256xf32>
    %cst_28 = arith.constant dense<0.000000e+00> : vector<16xf32>
    %70 = vector.multi_reduction <add>, %69, %cst_28 [1] : vector<16x256xf32> to vector<16xf32>
    %71 = vector.shape_cast %70 : vector<16xf32> to vector<16x1xf32>
    %cst_29 = arith.constant 2.560000e+02 : f32
    %72 = vector.broadcast %cst_29 : f32 to vector<16x1xf32>
    %73 = arith.divf %71, %72 : vector<16x1xf32>
    %74 = vector.broadcast %73 : vector<16x1xf32> to vector<16x256xf32>
    %75 = arith.subf %69, %74 : vector<16x256xf32>
    %76 = arith.mulf %75, %75 : vector<16x256xf32>
    %cst_30 = arith.constant dense<0.000000e+00> : vector<16xf32>
    %77 = vector.multi_reduction <add>, %76, %cst_30 [1] : vector<16x256xf32> to vector<16xf32>
    %78 = vector.shape_cast %77 : vector<16xf32> to vector<16x1xf32>
    %cst_31 = arith.constant 2.560000e+02 : f32
    %79 = vector.broadcast %cst_31 : f32 to vector<16x1xf32>
    %80 = arith.divf %78, %79 : vector<16x1xf32>
    %81 = vector.broadcast %73 : vector<16x1xf32> to vector<16x256xf32>
    %82 = arith.subf %69, %81 : vector<16x256xf32>
    %cst_32 = arith.constant 9.99999974E-6 : f32
    %83 = vector.broadcast %cst_32 : f32 to vector<16x1xf32>
    %84 = arith.addf %80, %83 : vector<16x1xf32>
    %85 = math.rsqrt %84 : vector<16x1xf32>
    %86 = vector.broadcast %85 : vector<16x1xf32> to vector<16x256xf32>
    %87 = arith.mulf %82, %86 : vector<16x256xf32>
    %88 = vector.broadcast %2 : vector<1x256xf32> to vector<16x256xf32>
    %89 = arith.mulf %87, %88 : vector<16x256xf32>
    %90 = vector.broadcast %3 : vector<1x256xf32> to vector<16x256xf32>
    %91 = arith.addf %89, %90 : vector<16x256xf32>
    %92 = arith.truncf %91 : vector<16x256xf32> to vector<16x256xbf16>
    %c0_33 = arith.constant 0 : index
    %c0_34 = arith.constant 0 : index
    %93 = vector.load %arg6[%c0_33, %c0_34] : memref<256x512xbf16, #tpu.memory_space<vmem>>, vector<256x512xbf16>
    %cst_35 = arith.constant dense<0.000000e+00> : vector<16x512xf32>
    %94 = tpu.matmul %92, %93, %cst_35 {dimension_numbers = #tpu.dot_dimension_numbers<[1], [0], [0], [1], [0, 0, 1, 1], [], []>} : vector<16x256xbf16>, vector<256x512xbf16>, vector<16x512xf32> -> vector<16x512xf32>
    %c0_36 = arith.constant 0 : index
    %c0_37 = arith.constant 0 : index
    %95 = vector.load %arg7[%c0_36, %c0_37] : memref<1x512xf32, #tpu.memory_space<vmem>>, vector<1x512xf32>
    %96 = vector.broadcast %95 : vector<1x512xf32> to vector<16x512xf32>
    %97 = arith.addf %94, %96 : vector<16x512xf32>
    %cst_38 = arith.constant 5.000000e-01 : f32
    %98 = vector.broadcast %cst_38 : f32 to vector<16x512xf32>
    %99 = arith.mulf %98, %97 : vector<16x512xf32>
    %cst_39 = arith.constant 4.471500e-02 : f32
    %100 = vector.broadcast %cst_39 : f32 to vector<16x512xf32>
    %101 = arith.mulf %100, %97 : vector<16x512xf32>
    %102 = arith.mulf %101, %97 : vector<16x512xf32>
    %103 = arith.mulf %102, %97 : vector<16x512xf32>
    %104 = arith.addf %97, %103 : vector<16x512xf32>
    %cst_40 = arith.constant 0.797884583 : f32
    %105 = vector.broadcast %cst_40 : f32 to vector<16x512xf32>
    %106 = arith.mulf %105, %104 : vector<16x512xf32>
    %107 = math.tanh %106 : vector<16x512xf32>
    %cst_41 = arith.constant 1.000000e+00 : f32
    %108 = vector.broadcast %cst_41 : f32 to vector<16x512xf32>
    %109 = arith.addf %108, %107 : vector<16x512xf32>
    %110 = arith.mulf %99, %109 : vector<16x512xf32>
    %111 = arith.truncf %110 : vector<16x512xf32> to vector<16x512xbf16>
    %c0_42 = arith.constant 0 : index
    %c0_43 = arith.constant 0 : index
    %112 = vector.load %arg8[%c0_42, %c0_43] : memref<512x256xbf16, #tpu.memory_space<vmem>>, vector<512x256xbf16>
    %cst_44 = arith.constant dense<0.000000e+00> : vector<16x256xf32>
    %113 = tpu.matmul %111, %112, %cst_44 {dimension_numbers = #tpu.dot_dimension_numbers<[1], [0], [0], [1], [0, 0, 1, 1], [], []>} : vector<16x512xbf16>, vector<512x256xbf16>, vector<16x256xf32> -> vector<16x256xf32>
    %c0_45 = arith.constant 0 : index
    %c0_46 = arith.constant 0 : index
    %114 = vector.load %arg9[%c0_45, %c0_46] : memref<1x256xf32, #tpu.memory_space<vmem>>, vector<1x256xf32>
    %115 = vector.broadcast %114 : vector<1x256xf32> to vector<16x256xf32>
    %116 = arith.addf %113, %115 : vector<16x256xf32>
    %117 = arith.addf %69, %116 : vector<16x256xf32>
    %c0_47 = arith.constant 0 : index
    %c0_48 = arith.constant 0 : index
    %c0_49 = arith.constant 0 : index
    %118 = vector.load %arg14[%c0_47, %c0_48, %c0_49] : memref<1x16x256xf32, #tpu.memory_space<vmem>>, vector<1x16x256xf32>
    %119 = vector.shape_cast %118 : vector<1x16x256xf32> to vector<16x256xf32>
    %120 = vector.shape_cast %117 : vector<16x256xf32> to vector<1x16x256xf32>
    tpu.vector_store %arg14[%c0_47, %c0_48, %c0_49], %120 {strides = array<i32>} : memref<1x16x256xf32, #tpu.memory_space<vmem>>, vector<1x16x256xf32>,
    return
  }
  func.func @transform_0(%arg0: i32, %arg1: i32) -> (i32, i32, i32) {
    %c0_i32 = arith.constant 0 : i32
    %c0_i32_0 = arith.constant 0 : i32
    %c0_i32_1 = arith.constant 0 : i32
    return %arg0, %c0_i32, %c0_i32_0 : i32, i32, i32
  }
  func.func @transform_1(%arg0: i32, %arg1: i32) -> (i32, i32) {
    %c0_i32 = arith.constant 0 : i32
    %c0_i32_0 = arith.constant 0 : i32
    %c0_i32_1 = arith.constant 0 : i32
    return %c0_i32, %c0_i32_0 : i32, i32
  }
  func.func @transform_2(%arg0: i32, %arg1: i32) -> (i32, i32) {
    %c0_i32 = arith.constant 0 : i32
    %c0_i32_0 = arith.constant 0 : i32
    %c0_i32_1 = arith.constant 0 : i32
    return %c0_i32, %c0_i32_0 : i32, i32
  }
  func.func @transform_3(%arg0: i32, %arg1: i32) -> (i32, i32) {
    %c0_i32 = arith.constant 0 : i32
    %c0_i32_0 = arith.constant 0 : i32
    %c0_i32_1 = arith.constant 0 : i32
    return %c0_i32, %c0_i32_0 : i32, i32
  }
  func.func @transform_4(%arg0: i32, %arg1: i32) -> (i32, i32) {
    %c0_i32 = arith.constant 0 : i32
    %c0_i32_0 = arith.constant 0 : i32
    %c0_i32_1 = arith.constant 0 : i32
    return %c0_i32, %c0_i32_0 : i32, i32
  }
  func.func @transform_5(%arg0: i32, %arg1: i32) -> (i32, i32) {
    %c0_i32 = arith.constant 0 : i32
    %c0_i32_0 = arith.constant 0 : i32
    %c0_i32_1 = arith.constant 0 : i32
    return %c0_i32, %c0_i32_0 : i32, i32
  }
  func.func @transform_6(%arg0: i32, %arg1: i32) -> (i32, i32) {
    %c0_i32 = arith.constant 0 : i32
    %c0_i32_0 = arith.constant 0 : i32
    %c0_i32_1 = arith.constant 0 : i32
    return %c0_i32, %c0_i32_0 : i32, i32
  }
  func.func @transform_7(%arg0: i32, %arg1: i32) -> (i32, i32) {
    %c0_i32 = arith.constant 0 : i32
    %c0_i32_0 = arith.constant 0 : i32
    %c0_i32_1 = arith.constant 0 : i32
    return %c0_i32, %c0_i32_0 : i32, i32
  }
  func.func @transform_8(%arg0: i32, %arg1: i32) -> (i32, i32) {
    %c0_i32 = arith.constant 0 : i32
    %c0_i32_0 = arith.constant 0 : i32
    %c0_i32_1 = arith.constant 0 : i32
    return %c0_i32, %c0_i32_0 : i32, i32
  }
  func.func @transform_9(%arg0: i32, %arg1: i32) -> (i32, i32) {
    %c0_i32 = arith.constant 0 : i32
    %c0_i32_0 = arith.constant 0 : i32
    %c0_i32_1 = arith.constant 0 : i32
    return %c0_i32, %c0_i32_0 : i32, i32
  }
  func.func @transform_10(%arg0: i32, %arg1: i32) -> (i32, i32) {
    %c0_i32 = arith.constant 0 : i32
    %c0_i32_0 = arith.constant 0 : i32
    %c0_i32_1 = arith.constant 0 : i32
    return %c0_i32, %c0_i32_0 : i32, i32
  }
  func.func @transform_11(%arg0: i32, %arg1: i32) -> (i32, i32) {
    %c0_i32 = arith.constant 0 : i32
    %c0_i32_0 = arith.constant 0 : i32
    %c0_i32_1 = arith.constant 0 : i32
    return %c0_i32, %c0_i32_0 : i32, i32
  }
  func.func @transform_12(%arg0: i32, %arg1: i32) -> (i32, i32, i32) {
    %c0_i32 = arith.constant 0 : i32
    %c0_i32_0 = arith.constant 0 : i32
    return %arg0, %arg1, %c0_i32 : i32, i32, i32
  }
}

</mosaic_0001>

<bundles_post_ra>
// kernel: tpu_custom_call.1
= control target key start
LH: loop header
LB: loop body
LE: loop exit
PB: predicated region body
PF: predicated region fallthrough
CT: control target
= control target key end

     0   :  { %s5903_s0 = inlined_call_operand.hbm [shape: f32[2,16,256], index: 0, kind: input, shape index: {}]   ;;  %s5904_s1 = inlined_call_operand.hbm [shape: bf16[256,256], index: 1, kind: input, shape index: {}]   ;;  %s5905_s2 = inlined_call_operand.hbm [shape: bf16[256,512], index: 2, kind: input, shape index: {}]   ;;  %s5906_s3 = inlined_call_operand.hbm [shape: bf16[256,256], index: 3, kind: input, shape index: {}]   ;;  %s5907_s4 = inlined_call_operand.hbm [shape: bf16[256,512], index: 4, kind: input, shape index: {}]   ;;  %s5908_s5 = inlined_call_operand.vmem [shape: f32[1,512], index: 5, kind: input, shape index: {}]   ;;  %s5909_s6 = inlined_call_operand.hbm [shape: bf16[512,256], index: 6, kind: input, shape index: {}]   ;;  %s5910_s7 = inlined_call_operand.vmem [shape: f32[1,256], index: 7, kind: input, shape index: {}]   ;;  %s5911_s8 = inlined_call_operand.vmem [shape: f32[1,256], index: 8, kind: input, shape index: {}]   ;;  %s5912_s9 = inlined_call_operand.vmem [shape: f32[1,256], index: 9, kind: input, shape index: {}]   ;;  %s5913_s10 = inlined_call_operand.vmem [shape: f32[1,256], index: 10, kind: input, shape index: {}]   ;;  %s5914_s11 = inlined_call_operand.vmem [shape: f32[1,256], index: 11, kind: input, shape index: {}]   ;;  %s5915_s12 = inlined_call_operand.hbm [shape: f32[2,16,256], index: 12, kind: output, shape index: {}]  }
   0x1   :  { %5925 = sst [smem:[#allocation23_spill]] %s5904_s1 }
   0x2   :  { %5926 = sst [smem:[#allocation24_spill]] %s5905_s2 }
   0x3   :  { %5927 = sst [smem:[#allocation25_spill]] %s5906_s3 }
   0x4   :  { %5928 = sst [smem:[#allocation26_spill]] %s5907_s4 }
   0x5   :  { %5929 = sst [smem:[#allocation27_spill]] %s5909_s6 }
   0x6   :  { %5930 = sst [smem:[#allocation28_spill]] %s5915_s12 }
   0x7   :  { %17 = vsyncpa [#allocation4], 0 }
   0x8   :  { %19 = vsyncpa [#allocation4 + $0x1], 0 }
   0x9   :  { %20 = vsyncpa [#allocation7], 0 }
   0xa   :  { %21 = vsyncpa [#allocation10], 0 }
   0xb   :  { %22 = vsyncpa [#allocation13], 0 }
   0xc   :  { %23 = vsyncpa [#allocation5], 0 }
   0xd   :  { %25 = vsyncpa [#allocation5 + $0x1], 0  ;;  %s5305_s21 = smov 0   ;;  %s5307_s22 = smov 0  }
   0xe   :  { %s5309_s23 = smov 0   ;;  %s5311_s24 = smov 0  }
   0xf   :  { %s5313_s25 = smov 0   ;;  %s5315_s26 = smov 0  }
  0x10 LB: > { %5931 = sst [smem:[#allocation20_spill]] %s5212_s24  ;;  %s5916_s27 = sadd.s32 4294967295, %s5220_s26   ;;  %s5220_s26 = sphi %s5315_s26, %s31_s26   ;;  %s5216_s25 = sphi %s5313_s25, %s5959_s25   ;;  %s5212_s24 = sphi %s5311_s24, %s5958_s24   ;;  %s5208_s23 = sphi %s5309_s23, %s5962_s23   ;;  %s5204_s22 = sphi %s5307_s22, %s5961_s22   ;;  %s5200_s21 = sphi %s5305_s21, %s5960_s21  }
  0x11   : > { %5932 = sst [smem:[#allocation21_spill]] %s5216_s25  ;;  %p4067_p0 = scmp.ge.s32.totalorder %s5220_s26, 1 }
  0x12   : > { %p5339_p1 = scmp.eq.s32.totalorder %s5916_s27, 0  ;;  %p333_p2 = scmp.lt.s32.totalorder %s5220_s26, 3 }
  0x13   : > { %s5222_s30 = smov [#allocation6]   ;;  %s5223_s15 = smov [#allocation9]  }
  0x14   : > { %p5344_p3 = pnand %p4067_p0, %p333_p2  ;;  %s345_s13 = sshll.u32 %s5222_s30, 4  ;;  %s346_s13 = int_to_ptr.vmem [resolvable:$true] %s345_s13 }
  0x15   : > { %s371_s16 = sshll.u32 %s5223_s15, 4  ;;  %s5224_s17 = smov [#allocation8]   ;;  %s372_s16 = int_to_ptr.vmem [resolvable:$true] %s371_s16 }
  0x16   : > { %p4438_p4 = pneg %p5344_p3  ;;  %s358_s18 = sshll.u32 %s5224_s17, 4  ;;  %s359_s18 = int_to_ptr.vmem [resolvable:$true] %s358_s18 }
  0x17   : > { %s4981_s20 = scalar_lea.vmem %s346_s13, 4096  ;;  %p4989_p11 = scmp.lt.s32.totalorder %s346_s13, %s346_s13 }
  0x18   : > { %p5353_p6 = pnand %p4438_p4, %p5339_p1  ;;  %p4982_p8 = scmp.ne.s32.totalorder %s346_s13, %s4981_s20 }
  0x19   : > { %p4990_p12 = scmp.lt.s32.totalorder %s4981_s20, %s4981_s20 }
  0x1a   : > { %p5359_p7 = pneg %p5353_p6 }
  0x1b   : > { %p4991_p13 = por %p4990_p12, %p4989_p11 }
  0x1c   : > { %p4984_p9 = pnand %p4982_p8, %p5359_p7 }
  0x1e   : > { %p4985_p10 = pneg %p4984_p9 }
  0x20   : > { %p4992_p0 = pnand %p4991_p13, %p4985_p10 }
  0x22   : > { %4995 = shalt.err (!%p4992_p0)
}
  0x23   : > { %s5918_s30 = smov 128   ;;  %s5919_s15 = smov 8  }
  0x24   : > { %s5937_s1 = sld [smem:[#allocation23_spill]]  ;;  %s5007_s12 = scalar_lea.vmem %s372_s16, 4096 }
  0x25   : > { %p5008_p2 = scmp.ne.s32.totalorder %s372_s16, %s5007_s12  ;;  %p5015_p9 = scmp.lt.s32.totalorder %s372_s16, %s372_s16 }
  0x26   : > { %p5016_p10 = scmp.lt.s32.totalorder %s5007_s12, %s5007_s12 }
  0x27   : > { %p5010_p4 = pnand %p5008_p2, %p5359_p7 }
  0x28   : > { %p5017_p11 = por %p5016_p10, %p5015_p9 }
  0x29   : > { %p5011_p8 = pneg %p5010_p4 }
  0x2a   : > { %4441 = dma.hbm_to_vmem [thread:$0]  (!%p5353_p6), %s5937_s1, 4096, %s346_s13, [#allocation7], %s5918_s30, %s5918_s30, %s5919_s15  }
  0x2b   : > { %p5018_p12 = pnand %p5017_p11, %p5011_p8 }
  0x2d   : > { %5021 = shalt.err (!%p5018_p12)
}
  0x2e   : > { %s5938_s3 = sld [smem:[#allocation25_spill]]  ;;  %s5033_s27 = scalar_lea.vmem %s359_s18, 8192 }
  0x2f   : > { %p5034_p13 = scmp.ne.s32.totalorder %s359_s18, %s5033_s27  ;;  %p5041_p4 = scmp.lt.s32.totalorder %s359_s18, %s359_s18 }
  0x30   : > { %p5042_p9 = scmp.lt.s32.totalorder %s5033_s27, %s5033_s27 }
  0x31   : > { %p5036_p0 = pnand %p5034_p13, %p5359_p7 }
  0x32   : > { %p5043_p8 = por %p5042_p9, %p5041_p4 }
  0x33   : > { %p5037_p2 = pneg %p5036_p0 }
  0x34   : > { %4447 = dma.hbm_to_vmem [thread:$0]  (!%p5353_p6), %s5938_s3, 4096, %s372_s16, [#allocation10], %s5918_s30, %s5918_s30, %s5919_s15  }
  0x35   : > { %p5044_p10 = pnand %p5043_p8, %p5037_p2 }
  0x37   : > { %5047 = shalt.err (!%p5044_p10)
}
  0x38   : > { %s5920_s12 = smov 256   ;;  %s5921_s13 = smov 16  }
  0x39   : > { %s5939_s2 = sld [smem:[#allocation24_spill]]  ;;  %s5229_s17 = smov [#allocation11]  }
  0x3a   : > { %s384_s20 = sshll.u32 %s5229_s17, 4  ;;  %s5230_s30 = smov [#allocation12]   ;;  %s385_s20 = int_to_ptr.vmem [resolvable:$true] %s384_s20 }
  0x3b   : > { %s400_s27 = sshll.u32 %s5230_s30, 4  ;;  %s5059_s15 = scalar_lea.vmem %s385_s20, 8192  ;;  %s401_s27 = int_to_ptr.vmem [resolvable:$true] %s400_s27 }
  0x3c   : > { %p5060_p11 = scmp.ne.s32.totalorder %s385_s20, %s5059_s15  ;;  %p5067_p0 = scmp.lt.s32.totalorder %s385_s20, %s385_s20 }
  0x3d   : > { %p5068_p2 = scmp.lt.s32.totalorder %s5059_s15, %s5059_s15 }
  0x3e   : > { %p5062_p12 = pnand %p5060_p11, %p5359_p7 }
  0x3f   : > { %4444 = dma.hbm_to_vmem [thread:$0]  (!%p5353_p6), %s5939_s2, 8192, %s359_s18, [#allocation7], %s5920_s12, %s5920_s12, %s5921_s13  }
  0x40   : > { %p5063_p13 = pneg %p5062_p12  ;;  %p5069_p4 = por %p5068_p2, %p5067_p0 }
  0x42   : > { %p5070_p9 = pnand %p5069_p4, %p5063_p13 }
  0x44   : > { %5073 = shalt.err (!%p5070_p9)
}
  0x45   : > { %s5940_s4 = sld [smem:[#allocation26_spill]]  ;;  %s5085_s30 = scalar_lea.vmem %s401_s27, 8192 }
  0x46   : > { %p5086_p8 = scmp.ne.s32.totalorder %s401_s27, %s5085_s30  ;;  %p5093_p12 = scmp.lt.s32.totalorder %s401_s27, %s401_s27 }
  0x47   : > { %p5094_p0 = scmp.lt.s32.totalorder %s5085_s30, %s5085_s30 }
  0x48   : > { %p5088_p10 = pnand %p5086_p8, %p5359_p7 }
  0x49   : > { %p5095_p13 = por %p5094_p0, %p5093_p12 }
  0x4a   : > { %p5089_p11 = pneg %p5088_p10 }
  0x4b   : > { %4450 = dma.hbm_to_vmem [thread:$0]  (!%p5353_p6), %s5940_s4, 8192, %s385_s20, [#allocation10], %s5920_s12, %s5920_s12, %s5921_s13  }
  0x4c   : > { %p5096_p2 = pnand %p5095_p13, %p5089_p11 }
  0x4e   : > { %5099 = shalt.err (!%p5096_p2)
}
  0x4f   : > { %s5941_s15 = smov 8   ;;  %s5942_s16 = smov 128  }
  0x50   : > { %s5943_s6 = sld [smem:[#allocation27_spill]]  ;;  %s4066_s14 = sadd.s32 4294967294, %s5220_s26  }
  0x51   : > { %s43_s19 = sadd.s32 1, %s5216_s25  ;;  %s50_s20 = sadd.s32 1, %s5208_s23 }
  0x52   : > { %p45_p7 = scmp.ge.s32.totalorder %s43_s19, 2  ;;  %p57_p4 = scmp.ne.s32.totalorder %s5208_s23, %s5204_s22 }
  0x53   : > { %p58_p9 = scmp.eq.s32.totalorder %s5220_s26, 0  ;;  %p63_p8 = scmp.ne.s32.totalorder %s5204_s22, %s5200_s21 }
  0x54   : > { %s5964_s19 = smov (%p45_p7, %s43_s19), 0  ;;  %p326_p0 = scmp.eq.s32.totalorder %s4066_s14, 1 }
  0x55   : > { %5944 = sst [smem:[#allocation22_spill]] %s5964_s19  ;;  %p5423_p10 = por %p58_p9, %p57_p4 }
  0x56   : > { %4453 = dma.hbm_to_vmem [thread:$0]  (!%p5353_p6), %s5943_s6, 8192, %s401_s27, [#allocation13], %s5942_s16, %s5942_s16, %s5941_s15  }
  0x57   : > { %p5429_p6 = por %p5339_p1, %p63_p8  ;;  %s47_s30 = ssub.s32 %s5216_s25, %s5964_s19 }
  0x58   : > { %s5947_s15 = sadd.s32 4294967295, %s5220_s26   ;;  %p48_p12 = scmp.eq.s32.totalorder %s47_s30, 0 }
  0x59   : > { %p320_p11 = scmp.eq.s32.totalorder %s5947_s15, 1  ;;  %p4467_p2 = scmp.lt.s32.totalorder %s5220_s26, 2 }
  0x5a   : > { %s5443_s17 = scalar_select %p48_p12, %s5208_s23, %s50_s20  }
  0x5b   : > { %p5437_p13 = por %p320_p11, %p57_p4  ;;  %p5445_p7 = por %p326_p0, %p63_p8 }
  0x5c   : > { %s429_s12 = sand.u32 1, %s5208_s23   ;;  %s4376_s1 = sshll.u32 %s5216_s25, 9 }
  0x5d   : > { %s5948_s16 = scalar_select %p5437_p13, 1, 0 }
  0x5e   : > { %s5949_s18 = scalar_select %p5445_p7, 1, 0 }
  0x5f   : > { %s4074_s13 = sshll.u32 %s429_s12, 5  ;;  %s439_s15 = scalar_lea.hbm %s5903_s0, %s4376_s1 }
  0x60   : > { %s433_s30 = scalar_lea.vmem [#allocation3], %s4074_s13  ;;  %p5456_p4 = pnand %p4467_p2, %p5423_p10 }
  0x61   : > { %s440_s14 = sshll.u32 %s433_s30, 4  ;;  %s430_s20 = scalar_lea.sflag [#allocation4], %s429_s12  ;;  %s441_s14 = int_to_ptr.vmem [resolvable:$true] %s440_s14 }
  0x62   : > { %p5102_p9 = pneg %p5456_p4  ;;  %s5113_s6 = scalar_lea.vmem %s441_s14, 512 }
  0x63   : > { %p5114_p8 = scmp.ne.s32.totalorder %s441_s14, %s5113_s6  ;;  %s5231_s19 = smov [#allocation3]  }
  0x64   : > { %s5118_s25 = sshll.u32 %s5231_s19, 4  ;;  %s5119_s25 = int_to_ptr.vmem [resolvable:$false] %s5118_s25 }
  0x65   : > { %p5116_p11 = pnand %p5114_p8, %p5102_p9  ;;  %s5120_s1 = scalar_lea.vmem %s5119_s25, 1024 }
  0x66   : > { %p5121_p0 = scmp.lt.s32.totalorder %s441_s14, %s5119_s25  ;;  %p5122_p5 = scmp.lt.s32.totalorder %s5120_s1, %s5113_s6 }
  0x67   : > { %p5117_p12 = pneg %p5116_p11 }
  0x68   : > { %p5123_p7 = por %p5122_p5, %p5121_p0 }
  0x6a   : > { %p5124_p13 = pnand %p5123_p7, %p5117_p12 }
  0x6c   : > { %5127 = shalt.err (!%p5124_p13)
}
  0x6d   : > { %s5951_s2 = smov 16   ;;  %s5952_s3 = smov 256  }
  0x6e   : > { %4457 = dma.hbm_to_vmem [thread:$0]  (!%p5456_p4), %s439_s15, 512, %s441_s14, %s430_s20, %s5952_s3, %s5952_s3, %s5951_s2  }
  0x6f   : > { %452 = sbr.rel (%p5344_p3) target bundleno = 2436 (0x984), region = 68  ;;  %s5470_s12 = sand.u32 (!%p5344_p3), 1, %s5204_s22  }
  0x70   : > { %s4078_s6 = sshll.u32 (!%p5344_p3), %s5470_s12, 5  ;;  %s455_s25 = scalar_lea.sflag (!%p5344_p3), [#allocation4], %s5470_s12 }
  0x71   : > { %s5476_s13 = scalar_lea.vmem (!%p5344_p3), [#allocation3], %s4078_s6 }
  0x74   : > { %5179 = dma.done.wait (%p5429_p6), %s455_s25, 512  }
  0x75   : > { %5181 = vsyncadd (%p5429_p6), %s455_s25, 4294966784 }
  0x76   : > { %5183 = dma.done.wait (%p5339_p1), [#allocation7], 12288  }
  0x77   : > { %5185 = vsyncadd (%p5339_p1), [#allocation7], 4294955008 }
  0x78   : > { %5187 = dma.done.wait (%p5339_p1), [#allocation10], 12288  }
  0x79   : > { %5189 = vsyncadd (%p5339_p1), [#allocation10], 4294955008 }
  0x7a   : > { %5191 = dma.done.wait (%p5339_p1), [#allocation13], 8192  }
  0x7b   : > { %5193 = vsyncadd (%p5339_p1), [#allocation13], 4294959104  ;;  %v5495_v0 = vld [vmem:[%s5476_s13] sm:$0xff]  ;;  %v5498_v1 = vld [vmem:[%s5476_s13 + $0x8] sm:$0xff]  ;;  %vm5233_vm0 = vmmov 0   ;;  %vm2176_vm1 = vcmask 130048  }
  0x7c   : > { %v5501_v2 = vld [vmem:[%s5476_s13 + $0x10] sm:$0xff]  ;;  %v533_v3 = vadd.f32 %v5498_v1, %v5495_v0  ;;  %v5506_v4 = vld [vmem:[%s5476_s13 + $0x18] sm:$0xff]  ;;  %s5953_s3 = sld [smem:[#allocation20_spill]]  ;;  %s518_s25 = scalar_lea.vmem [#allocation14], %s4078_s6 }
  0x7d   : > { %v536_v5 = vadd.f32 %v5506_v4, %v5501_v2  ;;  %v4538_v6 = vld [vmem:[#allocation8 + $0xe4] ss:$16 sps:$4 sm:$0xff]   ;;  %v4540_v7 = vld [vmem:[#allocation8 + $0xe0] ss:$16 sps:$4 sm:$0xff]   ;;  %v4541_v8 = vld [vmem:[#allocation8 + $0xec] ss:$16 sps:$4 sm:$0xff]  }
  0x7e   : > { %534 = vadd.xlane.f32.xlu0 %v533_v3  ;;  %1107 = vadd.xlane.f32.xlu1 %v533_v3  ;;  %v4543_v9 = vld [vmem:[#allocation8 + $0xe8] ss:$16 sps:$4 sm:$0xff]   ;;  %v4544_v10 = vld [vmem:[#allocation8 + $0xc4] ss:$16 sps:$4 sm:$0xff]   ;;  %v4547_v11 = vld [vmem:[#allocation8 + $0xcc] ss:$16 sps:$4 sm:$0xff]  }
  0x7f   : > { %982 = vmatprep.subr.bf16.mxu0 %v4538_v6  ;;  %1025 = vmatprep.subr.bf16.mxu1 %v4541_v8  ;;  %v4546_v12 = vld [vmem:[#allocation8 + $0xc0] ss:$16 sps:$4 sm:$0xff]   ;;  %v4549_v13 = vld [vmem:[#allocation8 + $0xc8] ss:$16 sps:$4 sm:$0xff]   ;;  %v4550_v14 = vld [vmem:[#allocation8 + $0xa4] ss:$16 sps:$4 sm:$0xff]  }
  0x80   : > { %983 = vmatpush1.bf16.msra.mxu0 %v4540_v7  ;;  %1026 = vmatpush1.bf16.msra.mxu1 %v4543_v9  ;;  %v4553_v15 = vld [vmem:[#allocation8 + $0xac] ss:$16 sps:$4 sm:$0xff]   ;;  %v4552_v16 = vld [vmem:[#allocation8 + $0xa0] ss:$16 sps:$4 sm:$0xff]   ;;  %v4555_v17 = vld [vmem:[#allocation8 + $0xa8] ss:$16 sps:$4 sm:$0xff]  }
  0x81   : > { %984 = vmatprep.subr.bf16.mxu0 %v4544_v10  ;;  %1027 = vmatprep.subr.bf16.mxu1 %v4547_v11  ;;  %v4556_v18 = vld [vmem:[#allocation8 + $0x84] ss:$16 sps:$4 sm:$0xff]   ;;  %v4559_v19 = vld [vmem:[#allocation8 + $0x8c] ss:$16 sps:$4 sm:$0xff]   ;;  %v4558_v20 = vld [vmem:[#allocation8 + $0x80] ss:$16 sps:$4 sm:$0xff]  }
  0x82   : > { %537 = vadd.xlane.f32.xlu0 %v536_v5  ;;  %1110 = vadd.xlane.f32.xlu1 %v536_v5  ;;  %v4561_v21 = vld [vmem:[#allocation8 + $0x88] ss:$16 sps:$4 sm:$0xff]   ;;  %v4562_v22 = vld [vmem:[#allocation8 + $0x64] ss:$16 sps:$4 sm:$0xff]   ;;  %v4565_v23 = vld [vmem:[#allocation8 + $0x6c] ss:$16 sps:$4 sm:$0xff]  }
  0x83   : > { %v4564_v24 = vld [vmem:[#allocation8 + $0x60] ss:$16 sps:$4 sm:$0xff]   ;;  %v4567_v25 = vld [vmem:[#allocation8 + $0x68] ss:$16 sps:$4 sm:$0xff]   ;;  %v4568_v26 = vld [vmem:[#allocation8 + $0x44] ss:$16 sps:$4 sm:$0xff]  }
  0x84   : > { %985 = vmatpush1.bf16.msra.mxu0 %v4546_v12  ;;  %1028 = vmatpush1.bf16.msra.mxu1 %v4549_v13  ;;  %v4571_v27 = vld [vmem:[#allocation8 + $0x4c] ss:$16 sps:$4 sm:$0xff]   ;;  %v4570_v28 = vld [vmem:[#allocation8 + $0x40] ss:$16 sps:$4 sm:$0xff]   ;;  %v4573_v29 = vld [vmem:[#allocation8 + $0x48] ss:$16 sps:$4 sm:$0xff]  }
  0x85   : > { %986 = vmatprep.subr.bf16.mxu0 %v4550_v14  ;;  %1029 = vmatprep.subr.bf16.mxu1 %v4553_v15  ;;  %v4574_v30 = vld [vmem:[#allocation8 + $0x24] ss:$16 sps:$4 sm:$0xff]   ;;  %v4577_v31 = vld [vmem:[#allocation8 + $0x2c] ss:$16 sps:$4 sm:$0xff]   ;;  %v4576_v32 = vld [vmem:[#allocation8 + $0x20] ss:$16 sps:$4 sm:$0xff]  }
  0x86   : > { %v4579_v33 = vld [vmem:[#allocation8 + $0x28] ss:$16 sps:$4 sm:$0xff]   ;;  %v4580_v34 = vld [vmem:[#allocation8 + $0x4] ss:$16 sps:$4 sm:$0xff]   ;;  %v4583_v35 = vld [vmem:[#allocation8 + $0xc] ss:$16 sps:$4 sm:$0xff]  }
  0x87   : > { %v4582_v36 = vld [vmem:[#allocation8] ss:$16 sps:$4 sm:$0xff]   ;;  %v4585_v37 = vld [vmem:[#allocation8 + $0x8] ss:$16 sps:$4 sm:$0xff]   ;;  %v4586_v38 = vld [vmem:[#allocation8 + $0x1e4] ss:$16 sps:$4 sm:$0xff]  }
  0x88   : > { %987 = vmatpush1.bf16.msra.mxu0 %v4552_v16  ;;  %1030 = vmatpush1.bf16.msra.mxu1 %v4555_v17  ;;  %v4589_v39 = vld [vmem:[#allocation8 + $0x1ec] ss:$16 sps:$4 sm:$0xff]   ;;  %v4588_v40 = vld [vmem:[#allocation8 + $0x1e0] ss:$16 sps:$4 sm:$0xff]   ;;  %v4592_v6 = vld [vmem:[#allocation8 + $0x1c4] ss:$16 sps:$4 sm:$0xff]  }
  0x89   : > { %988 = vmatprep.subr.bf16.mxu0 %v4556_v18  ;;  %1031 = vmatprep.subr.bf16.mxu1 %v4559_v19  ;;  %v4594_v7 = vld [vmem:[#allocation8 + $0x1c0] ss:$16 sps:$4 sm:$0xff]   ;;  %v4595_v8 = vld [vmem:[#allocation8 + $0x1cc] ss:$16 sps:$4 sm:$0xff]   ;;  %v4597_v9 = vld [vmem:[#allocation8 + $0x1c8] ss:$16 sps:$4 sm:$0xff]  }
  0x8a   : > { %v4598_v10 = vld [vmem:[#allocation8 + $0x1a4] ss:$16 sps:$4 sm:$0xff]   ;;  %v4600_v11 = vld [vmem:[#allocation8 + $0x1a0] ss:$16 sps:$4 sm:$0xff]   ;;  %v4601_v12 = vld [vmem:[#allocation8 + $0x1ac] ss:$16 sps:$4 sm:$0xff]  }
  0x8b   : > { %v4603_v13 = vld [vmem:[#allocation8 + $0x1a8] ss:$16 sps:$4 sm:$0xff]   ;;  %v4604_v14 = vld [vmem:[#allocation8 + $0x184] ss:$16 sps:$4 sm:$0xff]   ;;  %v4606_v15 = vld [vmem:[#allocation8 + $0x180] ss:$16 sps:$4 sm:$0xff]  }
  0x8c   : > { %989 = vmatpush1.bf16.msra.mxu0 %v4558_v20  ;;  %1032 = vmatpush1.bf16.msra.mxu1 %v4561_v21  ;;  %v4607_v16 = vld [vmem:[#allocation8 + $0x18c] ss:$16 sps:$4 sm:$0xff]   ;;  %v4609_v17 = vld [vmem:[#allocation8 + $0x188] ss:$16 sps:$4 sm:$0xff]   ;;  %v4610_v18 = vld [vmem:[#allocation8 + $0x164] ss:$16 sps:$4 sm:$0xff]  }
  0x8d   : > { %990 = vmatprep.subr.bf16.mxu0 %v4562_v22  ;;  %1033 = vmatprep.subr.bf16.mxu1 %v4565_v23  ;;  %v4612_v19 = vld [vmem:[#allocation8 + $0x160] ss:$16 sps:$4 sm:$0xff]   ;;  %v4613_v20 = vld [vmem:[#allocation8 + $0x16c] ss:$16 sps:$4 sm:$0xff]   ;;  %v4615_v21 = vld [vmem:[#allocation8 + $0x168] ss:$16 sps:$4 sm:$0xff]  }
  0x8e   : > { %v4616_v22 = vld [vmem:[#allocation8 + $0x144] ss:$16 sps:$4 sm:$0xff]   ;;  %v4619_v23 = vld [vmem:[#allocation8 + $0x14c] ss:$16 sps:$4 sm:$0xff]   ;;  %s4381_s4 = sshll.u32 %s5953_s3, 9  ;;  %s5954_s29 = sld [smem:[#allocation28_spill]] }
  0x8f   : > { %s3915_s24 = scalar_lea.sflag [#allocation5], %s5470_s12  ;;  %p5955_p3 = scmp.ne.s32.totalorder %s5948_s16, 0 }
  0x90   : > { %991 = vmatpush1.bf16.msra.mxu0 %v4564_v24  ;;  %1034 = vmatpush1.bf16.msra.mxu1 %v4567_v25  ;;  %v4618_v24 = vld [vmem:[#allocation8 + $0x140] ss:$16 sps:$4 sm:$0xff]   ;;  %v4621_v25 = vld [vmem:[#allocation8 + $0x148] ss:$16 sps:$4 sm:$0xff]   ;;  %s5237_s15 = smov [#allocation14]  }
  0x91   : > { %992 = vmatprep.subr.bf16.mxu0 %v4568_v26  ;;  %1035 = vmatprep.subr.bf16.mxu1 %v4571_v27  ;;  %v4622_v26 = vld [vmem:[#allocation8 + $0x124] ss:$16 sps:$4 sm:$0xff]   ;;  %v4625_v27 = vld [vmem:[#allocation8 + $0x12c] ss:$16 sps:$4 sm:$0xff]   ;;  %s5132_s30 = sshll.u32 %s5237_s15, 4  ;;  %s5133_s30 = int_to_ptr.vmem [resolvable:$false] %s5132_s30 }
  0x92   : > { %s5134_s14 = scalar_lea.vmem %s5133_s30, 1024 }
  0x94   : > { %993 = vmatpush1.bf16.msra.mxu0 %v4570_v28  ;;  %1036 = vmatpush1.bf16.msra.mxu1 %v4573_v29  ;;  %v4624_v28 = vld [vmem:[#allocation8 + $0x120] ss:$16 sps:$4 sm:$0xff]   ;;  %v4627_v29 = vld [vmem:[#allocation8 + $0x128] ss:$16 sps:$4 sm:$0xff]   ;;  %s5854_s19 = scalar_lea.hbm %s5954_s29, %s4381_s4 }
  0x95   : > { %994 = vmatprep.subr.bf16.mxu0 %v4574_v30  ;;  %1037 = vmatprep.subr.bf16.mxu1 %v4577_v31  ;;  %v4628_v30 = vld [vmem:[#allocation8 + $0x104] ss:$16 sps:$4 sm:$0xff]   ;;  %v4631_v31 = vld [vmem:[#allocation8 + $0x10c] ss:$16 sps:$4 sm:$0xff]  }
  0x98   : > { %995 = vmatpush1.bf16.msra.mxu0 %v4576_v32  ;;  %1038 = vmatpush1.bf16.msra.mxu1 %v4579_v33  ;;  %v4630_v32 = vld [vmem:[#allocation8 + $0x100] ss:$16 sps:$4 sm:$0xff]   ;;  %v4633_v33 = vld [vmem:[#allocation8 + $0x108] ss:$16 sps:$4 sm:$0xff]  }
  0x99   : > { %996 = vmatprep.subr.bf16.mxu0 %v4580_v34  ;;  %1039 = vmatprep.subr.bf16.mxu1 %v4583_v35  ;;  %v4636_v34 = vld [vmem:[#allocation6 + $0x74] ss:$8 sps:$4 sm:$0xff]  }
  0x9c   : > { %997 = vmatpush1.bf16.msra.mxu0 %v4582_v36  ;;  %1040 = vmatpush1.bf16.msra.mxu1 %v4585_v37 }
  0x9d   : > { %998 = vmatprep.subr.bf16.mxu0 %v4586_v38  ;;  %1041 = vmatprep.subr.bf16.mxu1 %v4589_v39 }
  0xa0   : > { %999 = vmatpush2.bf16.msra.mxu0 %v4588_v40 }
  0xa1   : > { %1000 = vmatprep.subr.bf16.mxu0 %v4592_v6 }
  0xa4   : > { %1001 = vmatpush2.bf16.msra.mxu0 %v4594_v7 }
  0xa5   : > { %1002 = vmatprep.subr.bf16.mxu0 %v4598_v10 }
  0xa8   : > { %1003 = vmatpush2.bf16.msra.mxu0 %v4600_v11 }
  0xa9   : > { %1004 = vmatprep.subr.bf16.mxu0 %v4604_v14 }
  0xac   : > { %1005 = vmatpush2.bf16.msra.mxu0 %v4606_v15 }
  0xad   : > { %1006 = vmatprep.subr.bf16.mxu0 %v4610_v18 }
  0xb0   : > { %1007 = vmatpush2.bf16.msra.mxu0 %v4612_v19 }
  0xb1   : > { %1008 = vmatprep.subr.bf16.mxu0 %v4616_v22 }
  0xb4   : > { %1009 = vmatpush2.bf16.msra.mxu0 %v4618_v24 }
  0xb5   : > { %1010 = vmatprep.subr.bf16.mxu0 %v4622_v26 }
  0xb8   : > { %1011 = vmatpush2.bf16.msra.mxu0 %v4624_v28  ;;  %v4642_v28 = vld [vmem:[#allocation6 + $0x54] ss:$8 sps:$4 sm:$0xff]  }
  0xb9   : > { %1012 = vmatprep.subr.bf16.mxu0 %v4628_v30  ;;  %v4645_v30 = vld [vmem:[#allocation6 + $0x44] ss:$8 sps:$4 sm:$0xff]  }
  0xbc   : > { %1013 = vmatpush2.bf16.msra.mxu0 %v4630_v32  ;;  %v4648_v32 = vld [vmem:[#allocation6 + $0x34] ss:$8 sps:$4 sm:$0xff]  }
  0xbd   : > { %1363 = vmatprep.subr.bf16.mxu0 %v4636_v34  ;;  %v4651_v34 = vld [vmem:[#allocation6 + $0x24] ss:$8 sps:$4 sm:$0xff]  }
 0x107   : > { %v535_v41 = vpop.xlane.xlu0 %534  ;;  %v1108_v42 = vpop.xlane.xlu1 %1107 }
 0x108   : > { %v540_v43 = vmul.f32 0.00390625, %v535_v41  ;;  %v1113_v44 = vmul.f32 0.00390625, %v1108_v42  ;;  %v567_v42 = vlaneseq }
 0x10a   : > { %v5511_v45 = vsub.f32 %v5495_v0, %v540_v43  ;;  %v5514_v46 = vsub.f32 %v5498_v1, %v540_v43  ;;  %v5517_v47 = vsub.f32 %v5495_v0, %v1113_v44  ;;  %v5520_v48 = vsub.f32 %v5498_v1, %v1113_v44 }
 0x10b   : > { %v538_v49 = vpop.xlane.xlu0 %537  ;;  %v1111_v50 = vpop.xlane.xlu1 %1110 }
 0x10c   : > { %v541_v51 = vmul.f32 0.00390625, %v538_v49  ;;  %v1114_v52 = vmul.f32 0.00390625, %v1111_v50  ;;  %v546_v53 = vmul.f32 %v5511_v45, %v5511_v45  ;;  %v547_v54 = vmul.f32 %v5514_v46, %v5514_v46 }
 0x10d   : > { %v1119_v55 = vmul.f32 %v5517_v47, %v5517_v47  ;;  %v1120_v56 = vmul.f32 %v5520_v48, %v5520_v48 }
 0x10e   : > { %v5531_v57 = vsub.f32 %v5501_v2, %v541_v51  ;;  %v5534_v58 = vsub.f32 %v5506_v4, %v541_v51  ;;  %v5537_v59 = vsub.f32 %v5501_v2, %v1114_v52  ;;  %v5540_v60 = vsub.f32 %v5506_v4, %v1114_v52  ;;  %v4591_v4 = vld [vmem:[#allocation8 + $0x1e8] ss:$16 sps:$4 sm:$0xff]  }
 0x10f   : > { %v550_v61 = vadd.f32 %v547_v54, %v546_v53  ;;  %v1123_v3 = vadd.f32 %v1120_v56, %v1119_v55  ;;  %1042 = vmatpush2.bf16.msra.mxu1 %v4591_v4  ;;  %v5550_v51 = vshrl.u32 %v567_v42, 7  ;;  %v521_v55 = vld [vmem:[%s5911_s8] sm:$0x3]  ;;  %v4663_v42 = vld [vmem:[#allocation6 + $0xe4] ss:$8 sps:$4 sm:$0xff]  }
 0x110   : > { %v548_v62 = vmul.f32 %v5531_v57, %v5531_v57  ;;  %v549_v63 = vmul.f32 %v5534_v58, %v5534_v58  ;;  %v1121_v0 = vmul.f32 %v5537_v59, %v5537_v59  ;;  %v1122_v1 = vmul.f32 %v5540_v60, %v5540_v60  ;;  %1043 = vmatprep.subr.bf16.mxu1 %v4595_v8 }
 0x111   : > { %551 = vadd.xlane.f32.xlu0 %v550_v61  ;;  %v5553_v53 = vsub.s32 0, %v5550_v51  ;;  %v5556_v54 = vsub.s32 1, %v5550_v51 }
 0x112   : > { %v553_v2 = vadd.f32 %v549_v63, %v548_v62  ;;  %v1126_v5 = vadd.f32 %v1122_v1, %v1121_v0  ;;  %v522_v63 = vld [vmem:[%s5912_s9] sm:$0x3] }
 0x113   : > { %1044 = vmatpush2.bf16.msra.mxu1 %v4597_v9  ;;  %v570_v56 = vrot.slane %v521_v55, %v5553_v53  ;;  %v574_v61 = vrot.slane %v521_v55, %v5556_v54  ;;  %v589_v4 = vrot.slane %v522_v63, %v5556_v54  ;;  %v4672_v55 = vld [vmem:[#allocation6 + $0xb4] ss:$8 sps:$4 sm:$0xff]  }
 0x114   : > { %554 = vadd.xlane.f32.xlu1 %v553_v2  ;;  %1045 = vmatprep.subr.bf16.mxu1 %v4601_v12 }
 0x115   : > { %1124 = vadd.xlane.f32.xlu0 %v1123_v3 }
 0x117   : > { %1046 = vmatpush2.bf16.msra.mxu1 %v4603_v13 }
 0x118   : > { %1127 = vadd.xlane.f32.xlu1 %v1126_v5  ;;  %1047 = vmatprep.subr.bf16.mxu1 %v4607_v16  ;;  %v585_v5 = vrot.slane %v522_v63, %v5553_v53  ;;  %v4678_v63 = vld [vmem:[#allocation6 + $0x94] ss:$8 sps:$4 sm:$0xff]  }
 0x11b   : > { %1048 = vmatpush2.bf16.msra.mxu1 %v4609_v17 }
 0x11c   : > { %1049 = vmatprep.subr.bf16.mxu1 %v4613_v20 }
 0x11f   : > { %1050 = vmatpush2.bf16.msra.mxu1 %v4615_v21  ;;  %v4634_v21 = vld [vmem:[#allocation6 + $0x70] ss:$8 sps:$4 sm:$0xff]  }
 0x120   : > { %1051 = vmatprep.subr.bf16.mxu1 %v4619_v23  ;;  %v4639_v23 = vld [vmem:[#allocation6 + $0x64] ss:$8 sps:$4 sm:$0xff]  }
 0x123   : > { %1052 = vmatpush2.bf16.msra.mxu1 %v4621_v25 }
 0x124   : > { %1053 = vmatprep.subr.bf16.mxu1 %v4625_v27 }
 0x127   : > { %1054 = vmatpush2.bf16.msra.mxu1 %v4627_v29  ;;  %v4640_v29 = vld [vmem:[#allocation6 + $0x50] ss:$8 sps:$4 sm:$0xff]  }
 0x128   : > { %1055 = vmatprep.subr.bf16.mxu1 %v4631_v31  ;;  %v4643_v31 = vld [vmem:[#allocation6 + $0x40] ss:$8 sps:$4 sm:$0xff]  }
 0x12b   : > { %1056 = vmatpush2.bf16.msra.mxu1 %v4633_v33  ;;  %v4646_v33 = vld [vmem:[#allocation6 + $0x30] ss:$8 sps:$4 sm:$0xff]  }
 0x19a   : > { %v552_v35 = vpop.xlane.xlu0 %551 }
 0x19b   : > { %v556_v36 = vmul.f32 0.00390625, %v552_v35  ;;  %v4649_v35 = vld [vmem:[#allocation6 + $0x20] ss:$8 sps:$4 sm:$0xff]  }
 0x19d   : > { %v558_v37 = vadd.f32 1e-05, %v556_v36  ;;  %v555_v38 = vpop.xlane.xlu1 %554  ;;  %v4654_v36 = vld [vmem:[#allocation6 + $0x14] ss:$8 sps:$4 sm:$0xff]  }
 0x19e   : > { %v557_v39 = vmul.f32 0.00390625, %v555_v38  ;;  %v1125_v40 = vpop.xlane.xlu0 %1124  ;;  %v4657_v38 = vld [vmem:[#allocation6 + $0x4] ss:$8 sps:$4 sm:$0xff]  }
 0x19f   : > { %4922 = vrsqrt.f32 %v558_v37  ;;  %v1129_v41 = vmul.f32 0.00390625, %v1125_v40  ;;  %v4652_v37 = vld [vmem:[#allocation6 + $0x10] ss:$8 sps:$4 sm:$0xff]   ;;  %v4660_v40 = vld [vmem:[#allocation6 + $0xf4] ss:$8 sps:$4 sm:$0xff]  }
 0x1a0   : > { %v559_v43 = vadd.f32 1e-05, %v557_v39  ;;  %v4655_v39 = vld [vmem:[#allocation6] ss:$8 sps:$4 sm:$0xff]  }
 0x1a1   : > { %v1131_v44 = vadd.f32 1e-05, %v1129_v41  ;;  %v1128_v49 = vpop.xlane.xlu1 %1127  ;;  %v4658_v41 = vld [vmem:[#allocation6 + $0xf0] ss:$8 sps:$4 sm:$0xff]  }
 0x1a2   : > { %4924 = vrsqrt.f32 %v559_v43  ;;  %v1130_v50 = vmul.f32 0.00390625, %v1128_v49  ;;  %v4661_v43 = vld [vmem:[#allocation6 + $0xe0] ss:$8 sps:$4 sm:$0xff]   ;;  %v4664_v49 = vld [vmem:[#allocation6 + $0xd0] ss:$8 sps:$4 sm:$0xff]  }
 0x1a3   : > { %4926 = vrsqrt.f32 %v1131_v44  ;;  %v4666_v44 = vld [vmem:[#allocation6 + $0xd4] ss:$8 sps:$4 sm:$0xff]  }
 0x1a4   : > { %v1132_v52 = vadd.f32 1e-05, %v1130_v50  ;;  %v4669_v50 = vld [vmem:[#allocation6 + $0xc4] ss:$8 sps:$4 sm:$0xff]  }
 0x1a6   : > { %4928 = vrsqrt.f32 %v1132_v52  ;;  %v4667_v52 = vld [vmem:[#allocation6 + $0xc0] ss:$8 sps:$4 sm:$0xff]  }
 0x1ac   : > { %v4923_v62 = vpop.eup %4922 }
 0x1ad   : > { %v563_v0 = vmul.f32 %v4923_v62, %v5514_v46  ;;  %v562_v1 = vmul.f32 %v4923_v62, %v5511_v45  ;;  %v4673_v62 = vld [vmem:[#allocation6 + $0xa0] ss:$8 sps:$4 sm:$0xff]  }
 0x1af   : > { %v4925_v3 = vpop.eup %4924  ;;  %v578_v2 = vmul.f32 %v574_v61, %v563_v0  ;;  %v577_v6 = vmul.f32 %v570_v56, %v562_v1  ;;  %v4676_v0 = vld [vmem:[#allocation6 + $0x90] ss:$8 sps:$4 sm:$0xff]   ;;  %v4681_v1 = vld [vmem:[#allocation6 + $0x84] ss:$8 sps:$4 sm:$0xff]  }
 0x1b0   : > { %v4927_v7 = vpop.eup %4926  ;;  %v565_v8 = vmul.f32 %v4925_v3, %v5534_v58  ;;  %v564_v9 = vmul.f32 %v4925_v3, %v5531_v57  ;;  %v4679_v3 = vld [vmem:[#allocation6 + $0x80] ss:$8 sps:$4 sm:$0xff]  }
 0x1b1   : > { %v1136_v10 = vmul.f32 %v4927_v7, %v5520_v48  ;;  %v1135_v11 = vmul.f32 %v4927_v7, %v5517_v47  ;;  %v593_v45 = vadd.f32 %v589_v4, %v578_v2  ;;  %v592_v14 = vadd.f32 %v585_v5, %v577_v6 }
 0x1b2   : > { %v580_v12 = vmul.f32 %v574_v61, %v565_v8  ;;  %v579_v46 = vmul.f32 %v570_v56, %v564_v9  ;;  %v5232_v2 = vmov 0.0   ;;  %v5235_v6 = vmov 1934713408  }
 0x1b3   : > { %v4929_v13 = vpop.eup %4928  ;;  %v1151_v15 = vmul.f32 %v1136_v10, %v574_v61  ;;  %v1150_v16 = vmul.f32 %v1135_v11, %v570_v56  ;;  %4402 = vmatprep.subr.bf16.mxu1 %v5232_v2  ;;  %v1443_v7 = vunpack.c.l.s4 %v5235_v6 }
 0x1b4   : > { %v595_v17 = vadd.f32 %v589_v4, %v580_v12  ;;  %v594_v18 = vadd.f32 %v585_v5, %v579_v46  ;;  %v1138_v19 = vmul.f32 %v4929_v13, %v5540_v60  ;;  %v1137_v20 = vmul.f32 %v4929_v13, %v5537_v59  ;;  %v4637_v60 = vld [vmem:[#allocation6 + $0x60] ss:$8 sps:$4 sm:$0xff]  }
 0x1b5   : > { %v5576_v58 = vadd.f32 %v1150_v16, %v585_v5  ;;  %v1166_v24 = vadd.f32 %v1151_v15, %v589_v4 }
 0x1b6   : > { %v597_v57 = vpack.c.bf16 %v595_v17, %v593_v45  ;;  %v596_v48 = vpack.c.bf16 %v594_v18, %v592_v14  ;;  %v1153_v22 = vmul.f32 %v1138_v19, %v574_v61  ;;  %v1152_v47 = vmul.f32 %v1137_v20, %v570_v56  ;;  %v4670_v56 = vld [vmem:[#allocation6 + $0xb0] ss:$8 sps:$4 sm:$0xff]   ;;  %v4675_v61 = vld [vmem:[#allocation6 + $0xa4] ss:$8 sps:$4 sm:$0xff]  }
 0x1b7   : > { %v1444_v45 = vunpack.c.0.s8 %v1443_v7 }
 0x1b8   : > { %1014 = vmatprep.mubr.bf16.mxu0 %v597_v57  ;;  %1057 = vmatprep.mubr.bf16.mxu1 %v597_v57  ;;  %v1168_v25 = vadd.f32 %v1153_v22, %v589_v4  ;;  %v5578_v26 = vadd.f32 %v1152_v47, %v585_v5  ;;  %v5234_v5 = vmov 1983009808  }
 0x1b9   : > { %1015 = vmatmul.mubr.bf16.vlgmr.msra.gmra.mxu0 %v596_v48  ;;  %1058 = vmatmul.mubr.bf16.vlgmr.msra.gmra.mxu1 %v596_v48  ;;  %v1428_v4 = vunpack.c.l.s4 %v5234_v5 }
 0x1ba   : > { %1364 = vmatpush1.bf16.msra.mxu0 %v4634_v21  ;;  %v1170_v27 = vpack.c.bf16 %v1168_v25, %v1166_v24  ;;  %v1169_v59 = vpack.c.bf16 %v5578_v26, %v5576_v58  ;;  %4404 = vmatprep.mubr.msk.bf16.mxu1 %vm5233_vm0, %v5232_v2 }
 0x1bb   : > { %1365 = vmatprep.subr.bf16.mxu0 %v4639_v23  ;;  %v1429_v10 = vunpack.c.0.s8 %v1428_v4  ;;  %v5592_v23 = vsub.s32 %v1444_v45, %v5550_v51 }
 0x1bc   : > { %1395 = vmatprep.mubr.bf16.mxu0 %v1170_v27 }
 0x1bd   : > { %v5589_v16 = vsub.s32 %v1429_v10, %v5550_v51 }
 0x1be   : > { %1366 = vmatpush1.bf16.msra.mxu0 %v4637_v60 }
 0x1bf   : > { %1367 = vmatprep.subr.bf16.mxu0 %v4642_v28 }
 0x1c2   : > { %1368 = vmatpush1.bf16.msra.mxu0 %v4640_v29  ;;  %v5236_v29 = vmov 0  }
 0x1c3   : > { %1369 = vmatprep.subr.bf16.mxu0 %v4645_v30 }
 0x1c6   : > { %1370 = vmatpush1.bf16.msra.mxu0 %v4643_v31 }
 0x1c7   : > { %1371 = vmatprep.subr.bf16.mxu0 %v4648_v32 }
 0x1ca   : > { %1372 = vmatpush1.bf16.msra.mxu0 %v4646_v33 }
 0x1cb   : > { %1373 = vmatprep.subr.bf16.mxu0 %v4651_v34 }
 0x1ce   : > { %1374 = vmatpush1.bf16.msra.mxu0 %v4649_v35 }
 0x1cf   : > { %1375 = vmatprep.subr.bf16.mxu0 %v4654_v36 }
 0x1d2   : > { %1376 = vmatpush1.bf16.msra.mxu0 %v4652_v37 }
 0x1d3   : > { %1377 = vmatprep.subr.bf16.mxu0 %v4657_v38 }
 0x1d6   : > { %1378 = vmatpush1.bf16.msra.mxu0 %v4655_v39 }
 0x1d7   : > { %1379 = vmatprep.subr.bf16.mxu0 %v4660_v40 }
 0x1da   : > { %1380 = vmatpush2.bf16.msra.mxu0 %v4658_v41 }
 0x1db   : > { %1381 = vmatprep.subr.bf16.mxu0 %v4663_v42 }
 0x1de   : > { %1382 = vmatpush2.bf16.msra.mxu0 %v4661_v43 }
 0x1df   : > { %1383 = vmatprep.subr.bf16.mxu0 %v4666_v44 }
 0x1e2   : > { %1384 = vmatpush2.bf16.msra.mxu0 %v4664_v49 }
 0x1e3   : > { %1385 = vmatprep.subr.bf16.mxu0 %v4669_v50 }
 0x1e6   : > { %1386 = vmatpush2.bf16.msra.mxu0 %v4667_v52 }
 0x1e7   : > { %1387 = vmatprep.subr.bf16.mxu0 %v4672_v55 }
 0x1ea   : > { %1388 = vmatpush2.bf16.msra.mxu0 %v4670_v56 }
 0x1eb   : > { %1389 = vmatprep.subr.bf16.mxu0 %v4675_v61 }
 0x1ee   : > { %1390 = vmatpush2.bf16.msra.mxu0 %v4673_v62 }
 0x1ef   : > { %1391 = vmatprep.subr.bf16.mxu0 %v4678_v63 }
 0x1f2   : > { %1392 = vmatpush2.bf16.msra.mxu0 %v4676_v0 }
 0x1f3   : > { %1393 = vmatprep.subr.bf16.mxu0 %v4681_v1 }
 0x1f6   : > { %1394 = vmatpush2.bf16.msra.mxu0 %v4679_v3 }
 0x1f7   : > { %4390 = vmatprep.subr.bf16.mxu0 %v5232_v2 }
 0x1f9   : > { %1396 = vmatmul.mubr.bf16.vlgmr.msra.gmra.mxu0 %v1169_v59 }
 0x1fa   : > { %4392 = vmatprep.mubr.msk.bf16.mxu0 %vm5233_vm0, %v5232_v2 }
 0x279   : > { %v1016_v8 = vpop.f32.mrf.mxu0  ;;  %v1059_v9 = vpop.f32.mrf.mxu1 }
 0x27b   : > { %v1018_v11 = vpop.f32.mrf.mxu0  ;;  %v1061_v12 = vpop.f32.mrf.mxu1 }
 0x27c   : > { %v4377_v46 = vpack.c.bf16 %v1018_v11, %v1016_v8  ;;  %v4378_v13 = vpack.c.bf16 %v1061_v12, %v1059_v9 }
 0x27d   : > { %v1020_v14 = vpop.f32.mrf.mxu0  ;;  %v1063_v15 = vpop.f32.mrf.mxu1 }
 0x27e   : > { %v1632_v17 = vrot.slane %v4377_v46, 4  ;;  %v1856_v18 = vrot.slane %v4378_v13, 4  ;;  %v1637_v19 = vshrl.u32 %v4377_v46, 16  ;;  %v1861_v20 = vshrl.u32 %v4378_v13, 16 }
 0x27f   : > { %v1022_v58 = vpop.f32.mrf.mxu0  ;;  %v1065_v47 = vpop.f32.mrf.mxu1 }
 0x280   : > { %v1636_v57 = vpack.i.b16 %v1632_v17, %v4377_v46  ;;  %v1638_v21 = vshrl.u32 %v1632_v17, 16  ;;  %v1860_v48 = vpack.i.b16 %v1856_v18, %v4378_v13  ;;  %v1862_v22 = vshrl.u32 %v1856_v18, 16 }
 0x281   : > { %v4379_v24 = vpack.c.bf16 %v1022_v58, %v1020_v14  ;;  %v4380_v28 = vpack.c.bf16 %v1065_v47, %v1063_v15 }
 0x282   : > { %v1639_v25 = vpack.i.b16 %v1638_v21, %v1637_v19  ;;  %v1653_v26 = vrot.slane %v1636_v57, %v5589_v16  ;;  %v1863_v60 = vpack.i.b16 %v1862_v22, %v1861_v20  ;;  %v1877_v27 = vrot.slane %v1860_v48, %v5589_v16 }
 0x283   : > { %v1633_v59 = vrot.slane %v4379_v24, 4  ;;  %v1643_v39 = vshrl.u32 %v4379_v24, 16  ;;  %v1857_v43 = vrot.slane %v4380_v28, 4  ;;  %v1867_v3 = vshrl.u32 %v4380_v28, 16 }
 0x284   : > { %v1654_v30 = vcombine.high %v1653_v26, %v5236_v29  ;;  %v1678_v31 = vrot.slane %v1639_v25, %v5589_v16  ;;  %v1878_v32 = vcombine.high %v1877_v27, %v5236_v29  ;;  %v1902_v33 = vrot.slane %v1863_v60, %v5589_v16 }
 0x285   : > { %v1642_v34 = vpack.i.b16 %v1633_v59, %v4379_v24  ;;  %v1644_v35 = vshrl.u32 %v1633_v59, 16  ;;  %v1885_v37 = vrot.slane %v1877_v27, %v5592_v23  ;;  %v1661_v55 = vrot.slane %v1653_v26, %v5592_v23 }
 0x286   : > { %v1679_v36 = vcombine.high %v1678_v31, %v5236_v29  ;;  %v1892_v38 = vrot.slane %v1878_v32, %v5592_v23  ;;  %v1668_v40 = vrot.slane %v1654_v30, %v5592_v23  ;;  %v1903_v41 = vcombine.high %v1902_v33, %v5236_v29 }
 0x287   : > { %v1703_v42 = vrot.slane %v1642_v34, %v5589_v16  ;;  %v1686_v44 = vrot.slane %v1678_v31, %v5592_v23  ;;  %v1645_v52 = vpack.i.b16 %v1644_v35, %v1643_v39  ;;  %v1910_v1 = vrot.slane %v1902_v33, %v5592_v23 }
 0x288   : > { %v1693_v49 = vrot.slane %v1679_v36, %v5592_v23  ;;  %v1970_v50 = vcombine.low %v1885_v37, %v1892_v38  ;;  %v1917_v56 = vrot.slane %v1903_v41, %v5592_v23  ;;  %v4193_v61 = vcombine.high %v1885_v37, %v1892_v38 }
 0x289   : > { %v1704_v62 = vcombine.high %v1703_v42, %v5236_v29  ;;  %v1746_v5 = vcombine.low %v1661_v55, %v1668_v40  ;;  %v4189_v4 = vcombine.high %v1661_v55, %v1668_v40  ;;  %v1711_v7 = vrot.slane %v1703_v42, %v5592_v23 }
 0x28a   : > { %v1770_v63 = vcombine.low %v1686_v44, %v1693_v49  ;;  %v4190_v0 = vcombine.high %v1686_v44, %v1693_v49  ;;  %v1977_v6 = vrot.slane %v1970_v50, %v5589_v16  ;;  %v1985_v8 = vrot.slane %v4193_v61, %v5589_v16 }
 0x28b   : > { %v1994_v9 = vcombine.low %v1910_v1, %v1917_v56  ;;  %v1718_v10 = vrot.slane %v1704_v62, %v5592_v23  ;;  %v1728_v11 = vrot.slane %v1645_v52, %v5589_v16  ;;  %v4194_v46 = vcombine.high %v1910_v1, %v1917_v56 }
 0x28c   : > { %v1777_v12 = vrot.slane %v1770_v63, %v5589_v16  ;;  %v1866_v13 = vpack.i.b16 %v1857_v43, %v4380_v28  ;;  %v1868_v45 = vshrl.u32 %v1857_v43, 16  ;;  %v1785_v14 = vrot.slane %v4190_v0, %v5589_v16 }
 0x28d   : > { %v1729_v15 = vcombine.high %v1728_v11, %v5236_v29  ;;  %v1794_v17 = vcombine.low %v1711_v7, %v1718_v10  ;;  %v4191_v18 = vcombine.high %v1711_v7, %v1718_v10  ;;  %v1753_v19 = vrot.slane %v1746_v5, %v5589_v16 }
 0x28e   : > { %v1761_v20 = vrot.slane %v4189_v4, %v5589_v16  ;;  %v1869_v58 = vpack.i.b16 %v1868_v45, %v1867_v3  ;;  %v1927_v57 = vrot.slane %v1866_v13, %v5589_v16  ;;  %v1736_v21 = vrot.slane %v1728_v11, %v5592_v23 }
 0x28f   : > { %v1743_v48 = vrot.slane %v1729_v15, %v5592_v23  ;;  %v1801_v22 = vrot.slane %v1794_v17, %v5589_v16  ;;  %v1809_v47 = vrot.slane %v4191_v18, %v5589_v16  ;;  %v2001_v24 = vrot.slane %v1994_v9, %v5589_v16 }
 0x290   : > { %v2009_v25 = vrot.slane %v4194_v46, %v5589_v16  ;;  %v1928_v26 = vcombine.high %v1927_v57, %v5236_v29  ;;  %v1952_v60 = vrot.slane %v1869_v58, %v5589_v16  ;;  %v1786_v28 = vcombine.low %v1777_v12, %v1785_v14 }
 0x291   : > { %v1818_v27 = vcombine.low %v1736_v21, %v1743_v48  ;;  %v4192_v59 = vcombine.high %v1736_v21, %v1743_v48  ;;  %v1986_v30 = vcombine.low %v1977_v6, %v1985_v8  ;;  %v1935_v31 = vrot.slane %v1927_v57, %v5592_v23 }
 0x292   : > { %v1942_v32 = vrot.slane %v1928_v26, %v5592_v23  ;;  %v1953_v33 = vcombine.high %v1952_v60, %v5236_v29  ;;  %v1762_v34 = vcombine.low %v1753_v19, %v1761_v20  ;;  %v1960_v37 = vrot.slane %v1952_v60, %v5592_v23 }
 0x293   : > { %v1825_v35 = vrot.slane %v1818_v27, %v5589_v16  ;;  %v1833_v36 = vrot.slane %v4192_v59, %v5589_v16  ;;  %v1810_v38 = vcombine.low %v1801_v22, %v1809_v47  ;;  %v2010_v42 = vcombine.low %v2001_v24, %v2009_v25 }
 0x294   : > { %v1967_v39 = vrot.slane %v1953_v33, %v5592_v23  ;;  %v2018_v40 = vcombine.low %v1935_v31, %v1942_v32  ;;  %v4195_v41 = vcombine.high %v1935_v31, %v1942_v32  ;;  %v5639_v43 = vrot.slane %v1786_v28, %v5592_v23 }
 0x295   : > { %v1834_v44 = vcombine.low %v1825_v35, %v1833_v36  ;;  %v1993_v49 = vrot.slane %v1986_v30, %v5592_v23  ;;  %v5645_v61 = vrot.slane %v1762_v34, %v5592_v23  ;;  %v5648_v62 = vrot.slane %v1810_v38, %v5592_v23 }
 0x296   : > { %v2025_v50 = vrot.slane %v2018_v40, %v5589_v16  ;;  %v2033_v52 = vrot.slane %v4195_v41, %v5589_v16  ;;  %v2042_v55 = vcombine.low %v1960_v37, %v1967_v39  ;;  %v4196_v56 = vcombine.high %v1960_v37, %v1967_v39 }
 0x297   : > { %v5651_v63 = vrot.slane %v1834_v44, %v5592_v23  ;;  %v2017_v0 = vrot.slane %v2010_v42, %v5592_v23  ;;  %v1844_v4 = vpack.i.b16 %v5639_v43, %v5645_v61  ;;  %v2069_v7 = vshrl.u32 %v1993_v49, 16 }
 0x298   : > { %v2049_v1 = vrot.slane %v2042_v55, %v5589_v16  ;;  %v2057_v3 = vrot.slane %v4196_v56, %v5589_v16  ;;  %v2034_v5 = vcombine.low %v2025_v50, %v2033_v52  ;;  %v1421_v47 = vpack.i.b16 %v5236_v29, %v5236_v29 }
 0x299   : > { %v1850_v6 = vpack.i.b16 %v5651_v63, %v5648_v62  ;;  %v2070_v8 = vshrl.u32 %v2017_v0, 16  ;;  %v2068_v13 = vpack.i.b16 %v2017_v0, %v1993_v49 }
 0x29a   : > { %v2041_v9 = vrot.slane %v2034_v5, %v5592_v23  ;;  %v2058_v10 = vcombine.low %v2049_v1, %v2057_v3 }
 0x29b   : > { %v4197_v11 = vcombine.low %v1844_v4, %v1850_v6  ;;  %v5661_v12 = vpack.i.b16 %v2070_v8, %v2069_v7 }
 0x29c   : > { %v2065_v46 = vrot.slane %v2058_v10, %v5592_v23  ;;  %v2075_v14 = vshrl.u32 %v2041_v9, 16 }
 0x29d   : > { %4391 = vmatpush3.bf16.xpose.msra.mxu0 %v4197_v11 }
 0x29e   : > { %v2074_v45 = vpack.i.b16 %v2065_v46, %v2041_v9  ;;  %4396 = vmatprep.subr.bf16.mxu0 %v5232_v2  ;;  %v2076_v15 = vshrl.u32 %v2065_v46, 16 }
 0x2a0   : > { %v4203_v17 = vcombine.low %v2068_v13, %v2074_v45  ;;  %v5665_v18 = vpack.i.b16 %v2076_v15, %v2075_v14  ;;  %v1852_v14 = vshrl.u32 %v5651_v63, 16 }
 0x2a2   : > { %4403 = vmatpush3.bf16.msra.mxu1 %v4203_v17  ;;  %v4205_v19 = vcombine.low %v5661_v12, %v5665_v18  ;;  %v4693_v12 = vld [vmem:[#allocation9 + $0x44] ss:$8 sps:$4 sm:$0xff]   ;;  %v4691_v18 = vld [vmem:[#allocation9 + $0x40] ss:$8 sps:$4 sm:$0xff]  }
 0x2a3   : > { %4408 = vmatprep.subr.bf16.mxu1 %v5232_v2 }
 0x2b9   : > { %v1397_v20 = vpop.f32.mrf.mxu0 }
 0x2bb   : > { %v1399_v58 = vpop.f32.mrf.mxu0 }
 0x2bd   : > { %v1401_v57 = vpop.f32.mrf.mxu0 }
 0x2be   : > { %v1406_v21 = vpack.c.bf16 %v1401_v57, %v1397_v20  ;;  %v1846_v20 = vshrl.u32 %v5639_v43, 16 }
 0x2bf   : > { %v1403_v48 = vpop.f32.mrf.mxu0 }
 0x2c0   : > { %v1407_v22 = vpack.c.bf16 %v1403_v48, %v1399_v58  ;;  %v1416_v24 = vshrl.u32 %v1406_v21, 16  ;;  %v1851_v58 = vshrl.u32 %v5648_v62, 16 }
 0x2c2   : > { %v1414_v25 = vpack.i.b16 %v1407_v22, %v1406_v21  ;;  %v1417_v26 = vshrl.u32 %v1407_v22, 16  ;;  %v1845_v22 = vshrl.u32 %v5645_v61, 16 }
 0x2c4   : > { %v1418_v60 = vpack.i.b16 %v1417_v26, %v1416_v24  ;;  %v1426_v27 = vcombine.high %v1414_v25, %v1421_v47  ;;  %v1433_v59 = vrot.slane %v1414_v25, %v5589_v16  ;;  %v1847_v26 = vpack.i.b16 %v1846_v20, %v1845_v22  ;;  %v4684_v22 = vld [vmem:[#allocation9 + $0x74] ss:$8 sps:$4 sm:$0xff]  }
 0x2c6   : > { %v1440_v28 = vrot.slane %v1426_v27, %v5589_v16  ;;  %v1441_v30 = vcombine.high %v1433_v59, %v5236_v29  ;;  %v1475_v31 = vcombine.high %v1418_v60, %v1421_v47  ;;  %v1482_v32 = vrot.slane %v1418_v60, %v5589_v16 }
 0x2c7   : > { %v1448_v33 = vrot.slane %v1433_v59, %v5592_v23  ;;  %v1853_v47 = vpack.i.b16 %v1852_v14, %v1851_v58 }
 0x2c8   : > { %v1455_v34 = vrot.slane %v1441_v30, %v5592_v23  ;;  %v1456_v35 = vcombine.high %v1440_v28, %v5236_v29  ;;  %v1489_v36 = vrot.slane %v1475_v31, %v5589_v16  ;;  %v1490_v37 = vcombine.high %v1482_v32, %v5236_v29 }
 0x2c9   : > { %v1463_v38 = vrot.slane %v1440_v28, %v5592_v23  ;;  %v1497_v42 = vrot.slane %v1482_v32, %v5592_v23  ;;  %v4198_v60 = vcombine.low %v1847_v26, %v1853_v47 }
 0x2ca   : > { %v1470_v39 = vrot.slane %v1456_v35, %v5592_v23  ;;  %v1505_v40 = vcombine.high %v1489_v36, %v5236_v29  ;;  %v1524_v41 = vcombine.low %v1448_v33, %v1455_v34  ;;  %v1504_v44 = vrot.slane %v1490_v37, %v5592_v23 }
 0x2cb   : > { %v1512_v49 = vrot.slane %v1489_v36, %v5592_v23  ;;  %v4185_v50 = vcombine.high %v1448_v33, %v1455_v34 }
 0x2cc   : > { %v1519_v52 = vrot.slane %v1505_v40, %v5592_v23  ;;  %v1531_v55 = vrot.slane %v1524_v41, %v5589_v16  ;;  %v1540_v56 = vcombine.low %v1463_v38, %v1470_v39  ;;  %v4186_v0 = vcombine.high %v1463_v38, %v1470_v39 }
 0x2cd   : > { %v1539_v1 = vrot.slane %v4185_v50, %v5589_v16  ;;  %v1573_v3 = vcombine.low %v1497_v42, %v1504_v44  ;;  %v4187_v5 = vcombine.high %v1497_v42, %v1504_v44 }
 0x2ce   : > { %v1547_v29 = vrot.slane %v1540_v56, %v5589_v16  ;;  %v1555_v4 = vrot.slane %v4186_v0, %v5589_v16  ;;  %v1589_v6 = vcombine.low %v1512_v49, %v1519_v52  ;;  %v4188_v7 = vcombine.high %v1512_v49, %v1519_v52 }
 0x2cf   : > { %v1580_v8 = vrot.slane %v1573_v3, %v5589_v16  ;;  %v1588_v9 = vrot.slane %v4187_v5, %v5589_v16  ;;  %v1556_v10 = vcombine.low %v1531_v55, %v1539_v1 }
 0x2d0   : > { %v1596_v11 = vrot.slane %v1589_v6, %v5589_v16  ;;  %v1604_v46 = vrot.slane %v4188_v7, %v5589_v16  ;;  %v1564_v13 = vcombine.low %v1547_v29, %v1555_v4 }
 0x2d1   : > { %v1605_v45 = vcombine.low %v1580_v8, %v1588_v9  ;;  %v1563_v57 = vrot.slane %v1556_v10, %v5592_v23 }
 0x2d2   : > { %v1571_v15 = vrot.slane %v1564_v13, %v5592_v23  ;;  %v1613_v17 = vcombine.low %v1596_v11, %v1604_v46 }
 0x2d3   : > { %v1612_v21 = vrot.slane %v1605_v45, %v5592_v23 }
 0x2d4   : > { %v1620_v48 = vrot.slane %v1613_v17, %v5592_v23  ;;  %v1572_v24 = vcombine.low %v1563_v57, %v1571_v15 }
 0x2d6   : > { %v1621_v25 = vcombine.low %v1612_v21, %v1620_v48  ;;  %v1626_v62 = vshrl.u32 %v1572_v24, 16 }
 0x2d8   : > { %v1624_v63 = vpack.i.b16 %v1621_v25, %v1572_v24  ;;  %v1627_v43 = vshrl.u32 %v1621_v25, 16 }
 0x2da   : > { %4393 = vmatmul.mubr.bf16.vlgmr.msra.gmra.mxu0 %v1624_v63  ;;  %v1628_v27 = vpack.i.b16 %v1627_v43, %v1626_v62  ;;  %v4682_v63 = vld [vmem:[#allocation9 + $0x70] ss:$8 sps:$4 sm:$0xff]   ;;  %v4687_v43 = vld [vmem:[#allocation9 + $0x64] ss:$8 sps:$4 sm:$0xff]   ;;  %v4685_v62 = vld [vmem:[#allocation9 + $0x60] ss:$8 sps:$4 sm:$0xff]  }
 0x2db   : > { %4397 = vmatpush3.bf16.xpose.msra.mxu0 %v4198_v60  ;;  %4398 = vmatprep.mubr.msk.bf16.mxu0 %vm5233_vm0, %v5232_v2 }
 0x2e2   : > { %4399 = vmatmul.mubr.bf16.vlgmr.msra.gmra.mxu0 %v1628_v27  ;;  %v4690_v27 = vld [vmem:[#allocation9 + $0x54] ss:$8 sps:$4 sm:$0xff]  }
 0x39a   : > { %v2116_v59 = vpop.f32.mrf.mxu0 }
 0x39b   : > { %v4199_v28 = vclamps-f32 %v2116_v59, 10000.0  ;;  %v4688_v59 = vld [vmem:[#allocation9 + $0x50] ss:$8 sps:$4 sm:$0xff]  }
 0x39c   : > { %v4394_v30 = vpop.f32.mrf.mxu0 }
 0x39d   : > { %v2177_v61 = vsel %vm2176_vm1, %v4199_v28, -inf  ;;  %v4699_v30 = vld [vmem:[#allocation9 + $0x24] ss:$8 sps:$4 sm:$0xff]  }
 0x39e   : > { %2178 = vmax.xlane.f32.xlu0 %v2177_v61  ;;  %v2119_v31 = vpop.f32.mrf.mxu0  ;;  %v4697_v61 = vld [vmem:[#allocation9 + $0x20] ss:$8 sps:$4 sm:$0xff]  }
 0x39f   : > { %v4200_v32 = vclamps-f32 %v2119_v31, 10000.0  ;;  %v4702_v31 = vld [vmem:[#allocation9 + $0x14] ss:$8 sps:$4 sm:$0xff]  }
 0x3a0   : > { %v4395_v33 = vpop.f32.mrf.mxu0 }
 0x3a1   : > { %v2180_v34 = vsel %vm2176_vm1, %v4200_v32, -inf  ;;  %v4705_v33 = vld [vmem:[#allocation9 + $0x4] ss:$8 sps:$4 sm:$0xff]  }
 0x3a2   : > { %2181 = vmax.xlane.f32.xlu1 %v2180_v34  ;;  %v2161_v35 = vpop.f32.mrf.mxu0  ;;  %v4703_v34 = vld [vmem:[#allocation9] ss:$8 sps:$4 sm:$0xff]  }
 0x3a3   : > { %v4201_v36 = vclamps-f32 %v2161_v35, 10000.0  ;;  %v4706_v35 = vld [vmem:[#allocation9 + $0xf0] ss:$8 sps:$4 sm:$0xff]  }
 0x3a4   : > { %v4400_v37 = vpop.f32.mrf.mxu0 }
 0x3a5   : > { %v2183_v38 = vsel %vm2176_vm1, %v4201_v36, -inf  ;;  %v4709_v37 = vld [vmem:[#allocation9 + $0xe0] ss:$8 sps:$4 sm:$0xff]  }
 0x3a6   : > { %2184 = vmax.xlane.f32.xlu0 %v2183_v38  ;;  %v2164_v39 = vpop.f32.mrf.mxu0  ;;  %v4711_v38 = vld [vmem:[#allocation9 + $0xe4] ss:$8 sps:$4 sm:$0xff]  }
 0x3a7   : > { %v4202_v40 = vclamps-f32 %v2164_v39, 10000.0  ;;  %v4714_v39 = vld [vmem:[#allocation9 + $0xd4] ss:$8 sps:$4 sm:$0xff]  }
 0x3a8   : > { %v4401_v41 = vpop.f32.mrf.mxu0 }
 0x3a9   : > { %v2186_v42 = vsel %vm2176_vm1, %v4202_v40, -inf  ;;  %v4717_v41 = vld [vmem:[#allocation9 + $0xc4] ss:$8 sps:$4 sm:$0xff]  }
 0x3aa   : > { %2187 = vmax.xlane.f32.xlu1 %v2186_v42  ;;  %v4715_v42 = vld [vmem:[#allocation9 + $0xc0] ss:$8 sps:$4 sm:$0xff]  }
 0x427   : > { %v2179_v44 = vpop.xlane.xlu0 %2178 }
 0x428   : > { %v2189_v49 = vsub.f32 %v4199_v28, %v2179_v44  ;;  %v4694_v28 = vld [vmem:[#allocation9 + $0x30] ss:$8 sps:$4 sm:$0xff]  }
 0x429   : > { %v4718_v44 = vld [vmem:[#allocation9 + $0xb0] ss:$8 sps:$4 sm:$0xff]  }
 0x42a   : > { %v2193_v50 = vmul.f32 1.442695, %v2189_v49  ;;  %v4720_v49 = vld [vmem:[#allocation9 + $0xb4] ss:$8 sps:$4 sm:$0xff]  }
 0x42b   : > { %v2182_v52 = vpop.xlane.xlu1 %2181 }
 0x42c   : > { %4930 = vpow2.f32 %v2193_v50  ;;  %v2190_v55 = vsub.f32 %v4200_v32, %v2182_v52  ;;  %v4700_v32 = vld [vmem:[#allocation9 + $0x10] ss:$8 sps:$4 sm:$0xff]   ;;  %v4723_v50 = vld [vmem:[#allocation9 + $0xa4] ss:$8 sps:$4 sm:$0xff]   ;;  %v4721_v52 = vld [vmem:[#allocation9 + $0xa0] ss:$8 sps:$4 sm:$0xff]  }
 0x42e   : > { %v2195_v56 = vmul.f32 1.442695, %v2190_v55  ;;  %v4726_v55 = vld [vmem:[#allocation9 + $0x94] ss:$8 sps:$4 sm:$0xff]  }
 0x42f   : > { %v2185_v0 = vpop.xlane.xlu0 %2184 }
 0x430   : > { %4932 = vpow2.f32 %v2195_v56  ;;  %v2191_v1 = vsub.f32 %v4201_v36, %v2185_v0  ;;  %v4708_v36 = vld [vmem:[#allocation9 + $0xf4] ss:$8 sps:$4 sm:$0xff]   ;;  %v4724_v56 = vld [vmem:[#allocation9 + $0x90] ss:$8 sps:$4 sm:$0xff]   ;;  %v4729_v0 = vld [vmem:[#allocation9 + $0x84] ss:$8 sps:$4 sm:$0xff]  }
 0x432   : > { %v2197_v3 = vmul.f32 1.442695, %v2191_v1  ;;  %v4727_v1 = vld [vmem:[#allocation9 + $0x80] ss:$8 sps:$4 sm:$0xff]  }
 0x433   : > { %v2188_v5 = vpop.xlane.xlu1 %2187 }
 0x434   : > { %4934 = vpow2.f32 %v2197_v3  ;;  %v2192_v29 = vsub.f32 %v4202_v40, %v2188_v5  ;;  %v4712_v40 = vld [vmem:[#allocation9 + $0xd0] ss:$8 sps:$4 sm:$0xff]  }
 0x436   : > { %v2199_v4 = vmul.f32 1.442695, %v2192_v29 }
 0x438   : > { %4936 = vpow2.f32 %v2199_v4 }
 0x439   : > { %v4931_v6 = vpop.eup %4930 }
 0x43a   : > { %v2201_v7 = vsel %vm2176_vm1, %v4931_v6, 0.0 }
 0x43b   : > { %2202 = vadd.xlane.f32.xlu0 %v2201_v7 }
 0x43d   : > { %v4933_v8 = vpop.eup %4932 }
 0x43e   : > { %v2204_v9 = vsel %vm2176_vm1, %v4933_v8, 0.0 }
 0x43f   : > { %2205 = vadd.xlane.f32.xlu1 %v2204_v9 }
 0x441   : > { %v4935_v10 = vpop.eup %4934 }
 0x442   : > { %v2207_v11 = vsel %vm2176_vm1, %v4935_v10, 0.0 }
 0x443   : > { %2208 = vadd.xlane.f32.xlu0 %v2207_v11 }
 0x445   : > { %v4937_v46 = vpop.eup %4936 }
 0x446   : > { %v2210_v13 = vsel %vm2176_vm1, %v4937_v46, 0.0 }
 0x447   : > { %2211 = vadd.xlane.f32.xlu1 %v2210_v13 }
 0x4c4   : > { %v2203_v45 = vpop.xlane.xlu0 %2202 }
 0x4c5   : > { %4938 = vrcp.f32 %v2203_v45 }
 0x4c8   : > { %v2206_v14 = vpop.xlane.xlu1 %2205 }
 0x4c9   : > { %4940 = vrcp.f32 %v2206_v14 }
 0x4cc   : > { %v2209_v15 = vpop.xlane.xlu0 %2208 }
 0x4cd   : > { %4942 = vrcp.f32 %v2209_v15 }
 0x4d0   : > { %v2212_v17 = vpop.xlane.xlu1 %2211 }
 0x4d1   : > { %4944 = vrcp.f32 %v2212_v17 }
 0x4d2   : > { %v4939_v20 = vpop.eup %4938 }
 0x4d3   : > { %v2217_v57 = vmul.f32 %v4939_v20, %v4931_v6 }
 0x4d6   : > { %v4941_v58 = vpop.eup %4940 }
 0x4d7   : > { %v2218_v21 = vmul.f32 %v4941_v58, %v4933_v8 }
 0x4d9   : > { %v2221_v48 = vpack.c.bf16 %v2218_v21, %v2217_v57 }
 0x4da   : > { %v4943_v47 = vpop.eup %4942 }
 0x4db   : > { %4405 = vmatmul.mubr.msk.bf16.vlgmr.msra.gmra.mxu1 %vm2176_vm1, %v2221_v48  ;;  %v2219_v25 = vmul.f32 %v4943_v47, %v4935_v10 }
 0x4dc   : > { %4409 = vmatpush3.bf16.msra.mxu1 %v4205_v19  ;;  %4410 = vmatprep.mubr.msk.bf16.mxu1 %vm5233_vm0, %v5232_v2  ;;  %v4696_v19 = vld [vmem:[#allocation9 + $0x34] ss:$8 sps:$4 sm:$0xff]  }
 0x4dd   : > { %2745 = vmatprep.subr.bf16.mxu1 %v4684_v22 }
 0x4de   : > { %v4945_v24 = vpop.eup %4944 }
 0x4df   : > { %v2220_v26 = vmul.f32 %v4945_v24, %v4937_v46 }
 0x4e1   : > { %v2222_v60 = vpack.c.bf16 %v2220_v26, %v2219_v25 }
 0x4e3   : > { %4411 = vmatmul.mubr.msk.bf16.vlgmr.msra.gmra.mxu1 %vm2176_vm1, %v2222_v60 }
 0x4e4   : > { %2746 = vmatpush1.bf16.msra.mxu1 %v4682_v63 }
 0x4e5   : > { %2747 = vmatprep.subr.bf16.mxu1 %v4687_v43 }
 0x4e8   : > { %2748 = vmatpush1.bf16.msra.mxu1 %v4685_v62 }
 0x4e9   : > { %2749 = vmatprep.subr.bf16.mxu1 %v4690_v27 }
 0x4ec   : > { %2750 = vmatpush1.bf16.msra.mxu1 %v4688_v59 }
 0x4ed   : > { %2751 = vmatprep.subr.bf16.mxu1 %v4693_v12 }
 0x4f0   : > { %2752 = vmatpush1.bf16.msra.mxu1 %v4691_v18 }
 0x4f1   : > { %2753 = vmatprep.subr.bf16.mxu1 %v4696_v19 }
 0x4f4   : > { %2754 = vmatpush1.bf16.msra.mxu1 %v4694_v28 }
 0x4f5   : > { %2755 = vmatprep.subr.bf16.mxu1 %v4699_v30 }
 0x4f8   : > { %2756 = vmatpush1.bf16.msra.mxu1 %v4697_v61 }
 0x4f9   : > { %2757 = vmatprep.subr.bf16.mxu1 %v4702_v31 }
 0x4fc   : > { %2758 = vmatpush1.bf16.msra.mxu1 %v4700_v32 }
 0x4fd   : > { %2759 = vmatprep.subr.bf16.mxu1 %v4705_v33 }
 0x500   : > { %2760 = vmatpush1.bf16.msra.mxu1 %v4703_v34 }
 0x501   : > { %2761 = vmatprep.subr.bf16.mxu1 %v4708_v36 }
 0x504   : > { %2762 = vmatpush2.bf16.msra.mxu1 %v4706_v35 }
 0x505   : > { %2763 = vmatprep.subr.bf16.mxu1 %v4711_v38 }
 0x508   : > { %2764 = vmatpush2.bf16.msra.mxu1 %v4709_v37 }
 0x509   : > { %2765 = vmatprep.subr.bf16.mxu1 %v4714_v39 }
 0x50c   : > { %2766 = vmatpush2.bf16.msra.mxu1 %v4712_v40 }
 0x50d   : > { %2767 = vmatprep.subr.bf16.mxu1 %v4717_v41 }
 0x510   : > { %2768 = vmatpush2.bf16.msra.mxu1 %v4715_v42 }
 0x511   : > { %2769 = vmatprep.subr.bf16.mxu1 %v4720_v49 }
 0x514   : > { %2770 = vmatpush2.bf16.msra.mxu1 %v4718_v44 }
 0x515   : > { %2771 = vmatprep.subr.bf16.mxu1 %v4723_v50 }
 0x518   : > { %2772 = vmatpush2.bf16.msra.mxu1 %v4721_v52 }
 0x519   : > { %2773 = vmatprep.subr.bf16.mxu1 %v4726_v55 }
 0x51c   : > { %2774 = vmatpush2.bf16.msra.mxu1 %v4724_v56 }
 0x51d   : > { %2775 = vmatprep.subr.bf16.mxu1 %v4729_v0 }
 0x520   : > { %2776 = vmatpush2.bf16.msra.mxu1 %v4727_v1 }
 0x59b   : > { %v2264_v3 = vpop.f32.mrf.mxu1 }
 0x59c   : > { %v2319_v6 = vcombine.high %v2264_v3, %v5232_v2  ;;  %v2326_v8 = vrot.slane %v2264_v3, %v5589_v16 }
 0x59d   : > { %v4406_v5 = vpop.f32.mrf.mxu1 }
 0x59e   : > { %v2333_v46 = vrot.slane %v2319_v6, %v5589_v16 }
 0x59f   : > { %v2267_v29 = vpop.f32.mrf.mxu1 }
 0x5a0   : > { %v2385_v15 = vcombine.high %v2267_v29, %v5232_v2  ;;  %v2392_v48 = vrot.slane %v2267_v29, %v5589_v16 }
 0x5a1   : > { %v4407_v4 = vpop.f32.mrf.mxu1 }
 0x5a2   : > { %v2399_v43 = vrot.slane %v2385_v15, %v5589_v16  ;;  %v4968_v15 = vld [vmem:[%s5476_s13 + $0x10] sm:$0xff] }
 0x5a3   : > { %v2312_v7 = vpop.f32.mrf.mxu1 }
 0x5a4   : > { %v2334_v9 = vcombine.high %v2312_v7, %v5232_v2  ;;  %v2341_v10 = vrot.slane %v2312_v7, %v5589_v16 }
 0x5a5   : > { %v4412_v11 = vpop.f32.mrf.mxu1 }
 0x5a6   : > { %v2348_v13 = vrot.slane %v2334_v9, %v5589_v16  ;;  %v2349_v45 = vcombine.low %v2326_v8, %v2341_v10  ;;  %v2350_v14 = vcombine.high %v2326_v8, %v2341_v10  ;;  %v4966_v10 = vld [vmem:[%s5476_s13] sm:$0xff] }
 0x5a7   : > { %v2315_v17 = vpop.f32.mrf.mxu1 }
 0x5a8   : > { %v2357_v20 = vrot.slane %v2349_v45, %v5592_v23  ;;  %v2364_v58 = vrot.slane %v2350_v14, %v5592_v23  ;;  %v2365_v57 = vcombine.low %v2333_v46, %v2348_v13  ;;  %v2366_v21 = vcombine.high %v2333_v46, %v2348_v13  ;;  %v4967_v46 = vld [vmem:[%s5476_s13 + $0x8] sm:$0xff] }
 0x5a9   : > { %v2400_v22 = vcombine.high %v2315_v17, %v5232_v2  ;;  %v2407_v47 = vrot.slane %v2315_v17, %v5589_v16  ;;  %v4413_v24 = vpop.f32.mrf.mxu1 }
 0x5aa   : > { %v2373_v25 = vrot.slane %v2365_v57, %v5592_v23  ;;  %v2380_v26 = vrot.slane %v2366_v21, %v5592_v23  ;;  %v2451_v63 = vcombine.low %v2357_v20, %v2364_v58  ;;  %v4207_v60 = vcombine.high %v2357_v20, %v2364_v58  ;;  %v4969_v20 = vld [vmem:[%s5476_s13 + $0x18] sm:$0xff]  ;;  %v4730_v21 = vld [vmem:[#allocation11 + $0xe0] ss:$16 sps:$4 sm:$0xff]   ;;  %v4738_v24 = vld [vmem:[#allocation11 + $0xc4] ss:$16 sps:$4 sm:$0xff]   ;;  %s3931_s13 = sshll.u32 %s518_s25, 4  ;;  %s5848_s13 = int_to_ptr.vmem [resolvable:$true] %s3931_s13 }
 0x5ab   : > { %v2414_v62 = vrot.slane %v2400_v22, %v5589_v16  ;;  %v2415_v27 = vcombine.low %v2392_v48, %v2407_v47  ;;  %v2416_v59 = vcombine.high %v2392_v48, %v2407_v47  ;;  %v4732_v48 = vld [vmem:[#allocation11 + $0xe4] ss:$16 sps:$4 sm:$0xff]   ;;  %v4733_v22 = vld [vmem:[#allocation11 + $0xe8] ss:$16 sps:$4 sm:$0xff]   ;;  %v4735_v47 = vld [vmem:[#allocation11 + $0xec] ss:$16 sps:$4 sm:$0xff]   ;;  %p5135_p6 = scmp.lt.s32.totalorder %s5848_s13, %s5133_s30 }
 0x5ac   : > { %v2467_v12 = vcombine.low %v2373_v25, %v2380_v26  ;;  %v4208_v18 = vcombine.high %v2373_v25, %v2380_v26  ;;  %v2458_v61 = vrot.slane %v2451_v63, %v5589_v16  ;;  %v2466_v31 = vrot.slane %v4207_v60, %v5589_v16  ;;  %3262 = vmatprep.subr.bf16.mxu0 %v4732_v48  ;;  %v4741_v25 = vld [vmem:[#allocation11 + $0xcc] ss:$16 sps:$4 sm:$0xff]   ;;  %v4736_v26 = vld [vmem:[#allocation11 + $0xc0] ss:$16 sps:$4 sm:$0xff]   ;;  %v4739_v63 = vld [vmem:[#allocation11 + $0xc8] ss:$16 sps:$4 sm:$0xff]  }
 0x5ad   : > { %v2423_v19 = vrot.slane %v2415_v27, %v5592_v23  ;;  %v2430_v2 = vrot.slane %v2416_v59, %v5592_v23  ;;  %v2431_v28 = vcombine.low %v2399_v43, %v2414_v62  ;;  %v2432_v30 = vcombine.high %v2399_v43, %v2414_v62  ;;  %3305 = vmatprep.subr.bf16.mxu1 %v4735_v47  ;;  %v4744_v60 = vld [vmem:[#allocation11 + $0xa4] ss:$16 sps:$4 sm:$0xff]   ;;  %v4747_v43 = vld [vmem:[#allocation11 + $0xac] ss:$16 sps:$4 sm:$0xff]   ;;  %v4742_v62 = vld [vmem:[#allocation11 + $0xa0] ss:$16 sps:$4 sm:$0xff]  }
 0x5ae   : > { %v2474_v32 = vrot.slane %v2467_v12, %v5589_v16  ;;  %v2482_v33 = vrot.slane %v4208_v18, %v5589_v16  ;;  %v2483_v50 = vcombine.low %v2458_v61, %v2466_v31  ;;  %3263 = vmatpush1.bf16.msra.mxu0 %v4730_v21  ;;  %v4745_v27 = vld [vmem:[#allocation11 + $0xa8] ss:$16 sps:$4 sm:$0xff]   ;;  %v4750_v59 = vld [vmem:[#allocation11 + $0x84] ss:$16 sps:$4 sm:$0xff]   ;;  %v4753_v12 = vld [vmem:[#allocation11 + $0x8c] ss:$16 sps:$4 sm:$0xff]  }
 0x5af   : > { %v2439_v34 = vrot.slane %v2431_v28, %v5592_v23  ;;  %v2446_v35 = vrot.slane %v2432_v30, %v5592_v23  ;;  %v2501_v36 = vcombine.low %v2423_v19, %v2430_v2  ;;  %v4209_v37 = vcombine.high %v2423_v19, %v2430_v2  ;;  %3264 = vmatprep.subr.bf16.mxu0 %v4738_v24  ;;  %v4748_v18 = vld [vmem:[#allocation11 + $0x80] ss:$16 sps:$4 sm:$0xff]   ;;  %v4751_v19 = vld [vmem:[#allocation11 + $0x88] ss:$16 sps:$4 sm:$0xff]   ;;  %v4756_v2 = vld [vmem:[#allocation11 + $0x64] ss:$16 sps:$4 sm:$0xff]  }
 0x5b0   : > { %v2491_v38 = vcombine.low %v2474_v32, %v2482_v33  ;;  %v2490_v0 = vrot.slane %v2483_v50, %v5592_v23  ;;  %v4759_v28 = vld [vmem:[#allocation11 + $0x6c] ss:$16 sps:$4 sm:$0xff]   ;;  %v4754_v30 = vld [vmem:[#allocation11 + $0x60] ss:$16 sps:$4 sm:$0xff]   ;;  %v4757_v61 = vld [vmem:[#allocation11 + $0x68] ss:$16 sps:$4 sm:$0xff]  }
 0x5b1   : > { %v2508_v39 = vrot.slane %v2501_v36, %v5589_v16  ;;  %v2516_v40 = vrot.slane %v4209_v37, %v5589_v16  ;;  %v2517_v41 = vcombine.low %v2439_v34, %v2446_v35  ;;  %v4210_v42 = vcombine.high %v2439_v34, %v2446_v35  ;;  %v4762_v31 = vld [vmem:[#allocation11 + $0x44] ss:$16 sps:$4 sm:$0xff]   ;;  %v4765_v32 = vld [vmem:[#allocation11 + $0x4c] ss:$16 sps:$4 sm:$0xff]   ;;  %v4760_v33 = vld [vmem:[#allocation11 + $0x40] ss:$16 sps:$4 sm:$0xff]  }
 0x5b2   : > { %v2498_v55 = vrot.slane %v2491_v38, %v5592_v23  ;;  %3265 = vmatpush1.bf16.msra.mxu0 %v4736_v26  ;;  %v4763_v34 = vld [vmem:[#allocation11 + $0x48] ss:$16 sps:$4 sm:$0xff]   ;;  %v4768_v35 = vld [vmem:[#allocation11 + $0x24] ss:$16 sps:$4 sm:$0xff]   ;;  %v4771_v36 = vld [vmem:[#allocation11 + $0x2c] ss:$16 sps:$4 sm:$0xff]  }
 0x5b3   : > { %v2524_v44 = vrot.slane %v2517_v41, %v5589_v16  ;;  %v2532_v49 = vrot.slane %v4210_v42, %v5589_v16  ;;  %v2533_v52 = vcombine.low %v2508_v39, %v2516_v40  ;;  %3266 = vmatprep.subr.bf16.mxu0 %v4744_v60  ;;  %v4766_v37 = vld [vmem:[#allocation11 + $0x20] ss:$16 sps:$4 sm:$0xff]   ;;  %v4769_v38 = vld [vmem:[#allocation11 + $0x28] ss:$16 sps:$4 sm:$0xff]   ;;  %v4774_v39 = vld [vmem:[#allocation11 + $0x4] ss:$16 sps:$4 sm:$0xff]  }
 0x5b4   : > { %v2500_v5 = vcombine.high %v2490_v0, %v2498_v55  ;;  %v2499_v4 = vcombine.low %v2490_v0, %v2498_v55  ;;  %v4777_v40 = vld [vmem:[#allocation11 + $0xc] ss:$16 sps:$4 sm:$0xff]   ;;  %v4772_v41 = vld [vmem:[#allocation11] ss:$16 sps:$4 sm:$0xff]   ;;  %v4775_v42 = vld [vmem:[#allocation11 + $0x8] ss:$16 sps:$4 sm:$0xff]  }
 0x5b5   : > { %v2541_v56 = vcombine.low %v2524_v44, %v2532_v49  ;;  %v2540_v1 = vrot.slane %v2533_v52, %v5592_v23  ;;  %v4780_v44 = vld [vmem:[#allocation11 + $0x1e4] ss:$16 sps:$4 sm:$0xff]   ;;  %v4783_v49 = vld [vmem:[#allocation11 + $0x1ec] ss:$16 sps:$4 sm:$0xff]   ;;  %v4778_v50 = vld [vmem:[#allocation11 + $0x1e0] ss:$16 sps:$4 sm:$0xff]  }
 0x5b6   : > { %3267 = vmatpush1.bf16.msra.mxu0 %v4742_v62  ;;  %v4781_v52 = vld [vmem:[#allocation11 + $0x1e8] ss:$16 sps:$4 sm:$0xff]   ;;  %v4795_v21 = vld [vmem:[#allocation11 + $0x1ac] ss:$16 sps:$4 sm:$0xff]   ;;  %v4798_v48 = vld [vmem:[#allocation11 + $0x184] ss:$16 sps:$4 sm:$0xff]  }
 0x5b7   : > { %v2548_v3 = vrot.slane %v2541_v56, %v5592_v23  ;;  %3268 = vmatprep.subr.bf16.mxu0 %v4750_v59  ;;  %v4796_v47 = vld [vmem:[#allocation11 + $0x180] ss:$16 sps:$4 sm:$0xff]   ;;  %v4799_v24 = vld [vmem:[#allocation11 + $0x188] ss:$16 sps:$4 sm:$0xff]   ;;  %v4807_v26 = vld [vmem:[#allocation11 + $0x16c] ss:$16 sps:$4 sm:$0xff]  }
 0x5b8   : > { %v4805_v60 = vld [vmem:[#allocation11 + $0x168] ss:$16 sps:$4 sm:$0xff]   ;;  %v4813_v62 = vld [vmem:[#allocation11 + $0x14c] ss:$16 sps:$4 sm:$0xff]   ;;  %s5128_s27 = scalar_lea.vmem %s5848_s13, 512 }
 0x5b9   : > { %v2550_v29 = vcombine.high %v2540_v1, %v2548_v3  ;;  %v2549_v6 = vcombine.low %v2540_v1, %v2548_v3  ;;  %v4811_v59 = vld [vmem:[#allocation11 + $0x148] ss:$16 sps:$4 sm:$0xff]   ;;  %p5129_p1 = scmp.ne.s32.totalorder %s5848_s13, %s5128_s27  ;;  %p5136_p13 = scmp.lt.s32.totalorder %s5134_s14, %s5128_s27 }
 0x5ba   : > { %3269 = vmatpush1.bf16.msra.mxu0 %v4748_v18  ;;  %v4819_v18 = vld [vmem:[#allocation11 + $0x12c] ss:$16 sps:$4 sm:$0xff]  }
 0x5bb   : > { %v2552_v16 = vpack.c.bf16 %v2550_v29, %v2500_v5  ;;  %v2551_v7 = vpack.c.bf16 %v2549_v6, %v2499_v4  ;;  %3270 = vmatprep.subr.bf16.mxu0 %v4756_v2  ;;  %v4817_v2 = vld [vmem:[#allocation11 + $0x128] ss:$16 sps:$4 sm:$0xff]   ;;  %p5130_p5 = pnand %p5129_p1, %p5955_p3  ;;  %p5137_p2 = por %p5136_p13, %p5135_p6 }
 0x5bd   : > { %2777 = vmatprep.mubr.bf16.mxu1 %v2552_v16  ;;  %p5131_p10 = pneg %p5130_p5 }
 0x5be   : > { %2778 = vmatmul.mubr.bf16.vlgmr.msra.gmra.mxu1 %v2551_v7  ;;  %3271 = vmatpush1.bf16.msra.mxu0 %v4754_v30  ;;  %v4825_v30 = vld [vmem:[#allocation11 + $0x10c] ss:$16 sps:$4 sm:$0xff]  }
 0x5bf   : > { %3306 = vmatpush1.bf16.msra.mxu1 %v4733_v22  ;;  %3272 = vmatprep.subr.bf16.mxu0 %v4762_v31  ;;  %v4801_v22 = vld [vmem:[#allocation11 + $0x18c] ss:$16 sps:$4 sm:$0xff]   ;;  %v4823_v31 = vld [vmem:[#allocation11 + $0x108] ss:$16 sps:$4 sm:$0xff]   ;;  %p5138_p7 = pnand %p5137_p2, %p5131_p10 }
 0x5c0   : > { %3307 = vmatprep.subr.bf16.mxu1 %v4741_v25  ;;  %v4804_v25 = vld [vmem:[#allocation11 + $0x164] ss:$16 sps:$4 sm:$0xff]  }
 0x5c2   : > { %3273 = vmatpush1.bf16.msra.mxu0 %v4760_v33  ;;  %v4831_v33 = vld [vmem:[#allocation12 + $0x174] ss:$8 sps:$4 sm:$0xff]  }
 0x5c3   : > { %3308 = vmatpush1.bf16.msra.mxu1 %v4739_v63  ;;  %3274 = vmatprep.subr.bf16.mxu0 %v4768_v35  ;;  %v4802_v63 = vld [vmem:[#allocation11 + $0x160] ss:$16 sps:$4 sm:$0xff]  }
 0x5c4   : > { %3309 = vmatprep.subr.bf16.mxu1 %v4747_v43  ;;  %v4810_v43 = vld [vmem:[#allocation11 + $0x144] ss:$16 sps:$4 sm:$0xff]  }
 0x5c6   : > { %3275 = vmatpush1.bf16.msra.mxu0 %v4766_v37 }
 0x5c7   : > { %3310 = vmatpush1.bf16.msra.mxu1 %v4745_v27  ;;  %3276 = vmatprep.subr.bf16.mxu0 %v4774_v39  ;;  %v4808_v27 = vld [vmem:[#allocation11 + $0x140] ss:$16 sps:$4 sm:$0xff]  }
 0x5c8   : > { %3311 = vmatprep.subr.bf16.mxu1 %v4753_v12  ;;  %v4816_v12 = vld [vmem:[#allocation11 + $0x124] ss:$16 sps:$4 sm:$0xff]  }
 0x5ca   : > { %3277 = vmatpush1.bf16.msra.mxu0 %v4772_v41 }
 0x5cb   : > { %3312 = vmatpush1.bf16.msra.mxu1 %v4751_v19  ;;  %3278 = vmatprep.subr.bf16.mxu0 %v4780_v44  ;;  %v4814_v19 = vld [vmem:[#allocation11 + $0x120] ss:$16 sps:$4 sm:$0xff]  }
 0x5cc   : > { %3313 = vmatprep.subr.bf16.mxu1 %v4759_v28  ;;  %v4822_v28 = vld [vmem:[#allocation11 + $0x104] ss:$16 sps:$4 sm:$0xff]  }
 0x5ce   : > { %3279 = vmatpush2.bf16.msra.mxu0 %v4778_v50 }
 0x5cf   : > { %3314 = vmatpush1.bf16.msra.mxu1 %v4757_v61  ;;  %v4820_v61 = vld [vmem:[#allocation11 + $0x100] ss:$16 sps:$4 sm:$0xff]  }
 0x5d0   : > { %3315 = vmatprep.subr.bf16.mxu1 %v4765_v32  ;;  %v4828_v32 = vld [vmem:[#allocation12 + $0x74] ss:$8 sps:$4 sm:$0xff]  }
 0x5d3   : > { %3316 = vmatpush1.bf16.msra.mxu1 %v4763_v34 }
 0x5d4   : > { %3317 = vmatprep.subr.bf16.mxu1 %v4771_v36 }
 0x5d7   : > { %3318 = vmatpush1.bf16.msra.mxu1 %v4769_v38 }
 0x5d8   : > { %3319 = vmatprep.subr.bf16.mxu1 %v4777_v40  ;;  %v523_v40 = vld [vmem:[%s5913_s10] sm:$0x3] }
 0x5d9   : > { %v2832_v50 = vrot.slane %v523_v40, %v5556_v54 }
 0x5db   : > { %3320 = vmatpush1.bf16.msra.mxu1 %v4775_v42  ;;  %v524_v42 = vld [vmem:[%s5914_s11] sm:$0x3] }
 0x5dc   : > { %3321 = vmatprep.subr.bf16.mxu1 %v4783_v49  ;;  %v2828_v49 = vrot.slane %v523_v40, %v5553_v53  ;;  %v4885_v40 = vld [vmem:[#allocation12 + $0x1e4] ss:$8 sps:$4 sm:$0xff]  }
 0x5df   : > { %3322 = vmatpush2.bf16.msra.mxu1 %v4781_v52 }
 0x67e   : > { %v2779_v8 = vpop.f32.mrf.mxu1 }
 0x67f   : > { %v5754_v11 = vadd.f32 %v4966_v10, %v2779_v8 }
 0x680   : > { %v2781_v9 = vpop.f32.mrf.mxu1 }
 0x681   : > { %v5757_v13 = vadd.f32 %v4967_v46, %v2781_v9  ;;  %v4784_v46 = vld [vmem:[#allocation11 + $0x1c0] ss:$16 sps:$4 sm:$0xff]  }
 0x682   : > { %v2783_v45 = vpop.f32.mrf.mxu1 }
 0x683   : > { %v2792_v23 = vadd.f32 %v5757_v13, %v5754_v11  ;;  %v5762_v17 = vadd.f32 %v4968_v15, %v2783_v45  ;;  %v4786_v45 = vld [vmem:[#allocation11 + $0x1c4] ss:$16 sps:$4 sm:$0xff]   ;;  %v4790_v15 = vld [vmem:[#allocation11 + $0x1a0] ss:$16 sps:$4 sm:$0xff]  }
 0x684   : > { %v2785_v14 = vpop.f32.mrf.mxu1  ;;  %3280 = vmatprep.subr.bf16.mxu0 %v4786_v45 }
 0x685   : > { %v5765_v58 = vadd.f32 %v4969_v20, %v2785_v14  ;;  %2793 = vadd.xlane.f32.xlu0 %v2792_v23  ;;  %v4787_v23 = vld [vmem:[#allocation11 + $0x1c8] ss:$16 sps:$4 sm:$0xff]   ;;  %v4789_v14 = vld [vmem:[#allocation11 + $0x1cc] ss:$16 sps:$4 sm:$0xff]   ;;  %3281 = vmatpush2.bf16.msra.mxu0 %v4784_v46  ;;  %v4792_v20 = vld [vmem:[#allocation11 + $0x1a4] ss:$16 sps:$4 sm:$0xff]  }
 0x686   : > { %3323 = vmatprep.subr.bf16.mxu1 %v4789_v14  ;;  %3282 = vmatprep.subr.bf16.mxu0 %v4792_v20  ;;  %v4834_v20 = vld [vmem:[#allocation12 + $0x64] ss:$8 sps:$4 sm:$0xff]  }
 0x687   : > { %v2795_v57 = vadd.f32 %v5765_v58, %v5762_v17  ;;  %3324 = vmatpush2.bf16.msra.mxu1 %v4787_v23 }
 0x688   : > { %3325 = vmatprep.subr.bf16.mxu1 %v4795_v21  ;;  %v4840_v21 = vld [vmem:[#allocation12 + $0x54] ss:$8 sps:$4 sm:$0xff]  }
 0x689   : > { %2796 = vadd.xlane.f32.xlu1 %v2795_v57  ;;  %v4793_v57 = vld [vmem:[#allocation11 + $0x1a8] ss:$16 sps:$4 sm:$0xff]   ;;  %3283 = vmatpush2.bf16.msra.mxu0 %v4790_v15 }
 0x68a   : > { %3284 = vmatprep.subr.bf16.mxu0 %v4798_v48  ;;  %v4829_v15 = vld [vmem:[#allocation12 + $0x170] ss:$8 sps:$4 sm:$0xff]   ;;  %v4843_v48 = vld [vmem:[#allocation12 + $0x154] ss:$8 sps:$4 sm:$0xff]  }
 0x68b   : > { %3326 = vmatpush2.bf16.msra.mxu1 %v4793_v57  ;;  %v4837_v57 = vld [vmem:[#allocation12 + $0x164] ss:$8 sps:$4 sm:$0xff]  }
 0x68c   : > { %3327 = vmatprep.subr.bf16.mxu1 %v4801_v22  ;;  %v4838_v22 = vld [vmem:[#allocation12 + $0x50] ss:$8 sps:$4 sm:$0xff]  }
 0x68d   : > { %3285 = vmatpush2.bf16.msra.mxu0 %v4796_v47  ;;  %v4841_v47 = vld [vmem:[#allocation12 + $0x150] ss:$8 sps:$4 sm:$0xff]  }
 0x68e   : > { %3286 = vmatprep.subr.bf16.mxu0 %v4804_v25  ;;  %v4849_v25 = vld [vmem:[#allocation12 + $0x144] ss:$8 sps:$4 sm:$0xff]  }
 0x68f   : > { %3328 = vmatpush2.bf16.msra.mxu1 %v4799_v24  ;;  %v4846_v24 = vld [vmem:[#allocation12 + $0x44] ss:$8 sps:$4 sm:$0xff]  }
 0x690   : > { %3329 = vmatprep.subr.bf16.mxu1 %v4807_v26  ;;  %v4844_v26 = vld [vmem:[#allocation12 + $0x40] ss:$8 sps:$4 sm:$0xff]  }
 0x691   : > { %3287 = vmatpush2.bf16.msra.mxu0 %v4802_v63  ;;  %v4847_v63 = vld [vmem:[#allocation12 + $0x140] ss:$8 sps:$4 sm:$0xff]  }
 0x692   : > { %3288 = vmatprep.subr.bf16.mxu0 %v4810_v43  ;;  %v4855_v43 = vld [vmem:[#allocation12 + $0x134] ss:$8 sps:$4 sm:$0xff]  }
 0x693   : > { %3330 = vmatpush2.bf16.msra.mxu1 %v4805_v60  ;;  %v4852_v60 = vld [vmem:[#allocation12 + $0x34] ss:$8 sps:$4 sm:$0xff]  }
 0x694   : > { %3331 = vmatprep.subr.bf16.mxu1 %v4813_v62  ;;  %v4850_v62 = vld [vmem:[#allocation12 + $0x30] ss:$8 sps:$4 sm:$0xff]  }
 0x695   : > { %3289 = vmatpush2.bf16.msra.mxu0 %v4808_v27  ;;  %v4853_v27 = vld [vmem:[#allocation12 + $0x130] ss:$8 sps:$4 sm:$0xff]  }
 0x696   : > { %3290 = vmatprep.subr.bf16.mxu0 %v4816_v12  ;;  %v4861_v12 = vld [vmem:[#allocation12 + $0x124] ss:$8 sps:$4 sm:$0xff]  }
 0x697   : > { %3332 = vmatpush2.bf16.msra.mxu1 %v4811_v59  ;;  %v4858_v59 = vld [vmem:[#allocation12 + $0x24] ss:$8 sps:$4 sm:$0xff]  }
 0x698   : > { %3333 = vmatprep.subr.bf16.mxu1 %v4819_v18  ;;  %v4856_v18 = vld [vmem:[#allocation12 + $0x20] ss:$8 sps:$4 sm:$0xff]  }
 0x699   : > { %3291 = vmatpush2.bf16.msra.mxu0 %v4814_v19  ;;  %v4859_v19 = vld [vmem:[#allocation12 + $0x120] ss:$8 sps:$4 sm:$0xff]  }
 0x69a   : > { %3292 = vmatprep.subr.bf16.mxu0 %v4822_v28  ;;  %v4867_v28 = vld [vmem:[#allocation12 + $0x114] ss:$8 sps:$4 sm:$0xff]  }
 0x69b   : > { %3334 = vmatpush2.bf16.msra.mxu1 %v4817_v2  ;;  %v4864_v2 = vld [vmem:[#allocation12 + $0x14] ss:$8 sps:$4 sm:$0xff]  }
 0x69c   : > { %3335 = vmatprep.subr.bf16.mxu1 %v4825_v30  ;;  %v4862_v30 = vld [vmem:[#allocation12 + $0x10] ss:$8 sps:$4 sm:$0xff]  }
 0x69d   : > { %3293 = vmatpush2.bf16.msra.mxu0 %v4820_v61  ;;  %v4865_v61 = vld [vmem:[#allocation12 + $0x110] ss:$8 sps:$4 sm:$0xff]  }
 0x69e   : > { %3820 = vmatprep.subr.bf16.mxu0 %v4828_v32  ;;  %v4873_v32 = vld [vmem:[#allocation12 + $0x104] ss:$8 sps:$4 sm:$0xff]  }
 0x69f   : > { %3336 = vmatpush2.bf16.msra.mxu1 %v4823_v31  ;;  %v4870_v31 = vld [vmem:[#allocation12 + $0x4] ss:$8 sps:$4 sm:$0xff]  }
 0x6a0   : > { %3863 = vmatprep.subr.bf16.mxu1 %v4831_v33  ;;  %v4868_v33 = vld [vmem:[#allocation12] ss:$8 sps:$4 sm:$0xff]  }
 0x70e   : > { %v2794_v55 = vpop.xlane.xlu0 %2793 }
 0x70f   : > { %v2798_v56 = vmul.f32 0.00390625, %v2794_v55 }
 0x711   : > { %v5770_v0 = vsub.f32 %v5754_v11, %v2798_v56  ;;  %v5773_v1 = vsub.f32 %v5757_v13, %v2798_v56  ;;  %v2843_v56 = vrot.slane %v524_v42, %v5553_v53 }
 0x712   : > { %v2797_v3 = vpop.xlane.xlu1 %2796 }
 0x713   : > { %v2799_v5 = vmul.f32 0.00390625, %v2797_v3  ;;  %v2804_v29 = vmul.f32 %v5770_v0, %v5770_v0  ;;  %v2805_v4 = vmul.f32 %v5773_v1, %v5773_v1  ;;  %v2847_v3 = vrot.slane %v524_v42, %v5556_v54  ;;  %v4883_v42 = vld [vmem:[#allocation12 + $0x1e0] ss:$8 sps:$4 sm:$0xff]  }
 0x715   : > { %v5780_v6 = vsub.f32 %v5762_v17, %v2799_v5  ;;  %v5783_v16 = vsub.f32 %v5765_v58, %v2799_v5  ;;  %v2808_v7 = vadd.f32 %v2805_v4, %v2804_v29 }
 0x717   : > { %2809 = vadd.xlane.f32.xlu0 %v2808_v7  ;;  %v2806_v8 = vmul.f32 %v5780_v6, %v5780_v6  ;;  %v2807_v9 = vmul.f32 %v5783_v16, %v5783_v16 }
 0x719   : > { %v2811_v10 = vadd.f32 %v2807_v9, %v2806_v8 }
 0x71b   : > { %2812 = vadd.xlane.f32.xlu1 %v2811_v10 }
 0x7a0   : > { %v2810_v34 = vpop.xlane.xlu0 %2809 }
 0x7a1   : > { %v2814_v35 = vmul.f32 0.00390625, %v2810_v34  ;;  %v4871_v34 = vld [vmem:[#allocation12 + $0x100] ss:$8 sps:$4 sm:$0xff]  }
 0x7a3   : > { %v2816_v36 = vadd.f32 1e-05, %v2814_v35  ;;  %v4876_v35 = vld [vmem:[#allocation12 + $0xf4] ss:$8 sps:$4 sm:$0xff]  }
 0x7a4   : > { %v2813_v37 = vpop.xlane.xlu1 %2812 }
 0x7a5   : > { %4946 = vrsqrt.f32 %v2816_v36  ;;  %v2815_v38 = vmul.f32 0.00390625, %v2813_v37  ;;  %v4879_v36 = vld [vmem:[#allocation12 + $0x1f4] ss:$8 sps:$4 sm:$0xff]   ;;  %v4874_v37 = vld [vmem:[#allocation12 + $0xf0] ss:$8 sps:$4 sm:$0xff]  }
 0x7a7   : > { %v2817_v39 = vadd.f32 1e-05, %v2815_v38  ;;  %v4877_v38 = vld [vmem:[#allocation12 + $0x1f0] ss:$8 sps:$4 sm:$0xff]  }
 0x7a9   : > { %4948 = vrsqrt.f32 %v2817_v39  ;;  %v4882_v39 = vld [vmem:[#allocation12 + $0xe4] ss:$8 sps:$4 sm:$0xff]  }
 0x7b2   : > { %v4947_v41 = vpop.eup %4946 }
 0x7b3   : > { %v2821_v44 = vmul.f32 %v4947_v41, %v5773_v1  ;;  %v2820_v52 = vmul.f32 %v4947_v41, %v5770_v0  ;;  %v4826_v0 = vld [vmem:[#allocation12 + $0x70] ss:$8 sps:$4 sm:$0xff]   ;;  %v4880_v41 = vld [vmem:[#allocation12 + $0xe0] ss:$8 sps:$4 sm:$0xff]  }
 0x7b5   : > { %v2836_v29 = vmul.f32 %v2832_v50, %v2821_v44  ;;  %v2835_v7 = vmul.f32 %v2828_v49, %v2820_v52  ;;  %v4888_v44 = vld [vmem:[#allocation12 + $0xd4] ss:$8 sps:$4 sm:$0xff]  }
 0x7b6   : > { %v4949_v55 = vpop.eup %4948  ;;  %v4891_v52 = vld [vmem:[#allocation12 + $0x1d4] ss:$8 sps:$4 sm:$0xff]  }
 0x7b7   : > { %v2823_v5 = vmul.f32 %v4949_v55, %v5783_v16  ;;  %v2822_v4 = vmul.f32 %v4949_v55, %v5780_v6  ;;  %v2851_v1 = vadd.f32 %v2847_v3, %v2836_v29  ;;  %v2850_v46 = vadd.f32 %v2843_v56, %v2835_v7  ;;  %v4832_v6 = vld [vmem:[#allocation12 + $0x60] ss:$8 sps:$4 sm:$0xff]   ;;  %v4894_v55 = vld [vmem:[#allocation12 + $0xc4] ss:$8 sps:$4 sm:$0xff]   ;;  %v4900_v29 = vld [vmem:[#allocation12 + $0xb4] ss:$8 sps:$4 sm:$0xff]  }
 0x7b8   : > { %v4835_v16 = vld [vmem:[#allocation12 + $0x160] ss:$8 sps:$4 sm:$0xff]   ;;  %v4898_v7 = vld [vmem:[#allocation12 + $0xb0] ss:$8 sps:$4 sm:$0xff]  }
 0x7b9   : > { %v2838_v8 = vmul.f32 %v2832_v50, %v2823_v5  ;;  %v2837_v9 = vmul.f32 %v2828_v49, %v2822_v4  ;;  %v4886_v49 = vld [vmem:[#allocation12 + $0xd0] ss:$8 sps:$4 sm:$0xff]   ;;  %v4895_v5 = vld [vmem:[#allocation12 + $0x1c0] ss:$8 sps:$4 sm:$0xff]   ;;  %v4903_v4 = vld [vmem:[#allocation12 + $0x1b4] ss:$8 sps:$4 sm:$0xff]  }
 0x7ba   : > { %v4889_v50 = vld [vmem:[#allocation12 + $0x1d0] ss:$8 sps:$4 sm:$0xff]  }
 0x7bb   : > { %v2853_v10 = vadd.f32 %v2847_v3, %v2838_v8  ;;  %v2852_v45 = vadd.f32 %v2843_v56, %v2837_v9  ;;  %v4897_v56 = vld [vmem:[#allocation12 + $0x1c4] ss:$8 sps:$4 sm:$0xff]   ;;  %v4892_v3 = vld [vmem:[#allocation12 + $0xc0] ss:$8 sps:$4 sm:$0xff]   ;;  %v4901_v8 = vld [vmem:[#allocation12 + $0x1b0] ss:$8 sps:$4 sm:$0xff]  }
 0x7bc   : > { %v4906_v9 = vld [vmem:[#allocation12 + $0xa4] ss:$8 sps:$4 sm:$0xff]  }
 0x7bd   : > { %v2855_v23 = vpack.c.bf16 %v2853_v10, %v2851_v1  ;;  %v2854_v14 = vpack.c.bf16 %v2852_v45, %v2850_v46  ;;  %v4909_v1 = vld [vmem:[#allocation12 + $0x1a4] ss:$8 sps:$4 sm:$0xff]   ;;  %v4904_v10 = vld [vmem:[#allocation12 + $0xa0] ss:$8 sps:$4 sm:$0xff]   ;;  %v4912_v45 = vld [vmem:[#allocation12 + $0x94] ss:$8 sps:$4 sm:$0xff]  }
 0x7be   : > { %v4907_v46 = vld [vmem:[#allocation12 + $0x1a0] ss:$8 sps:$4 sm:$0xff]  }
 0x7bf   : > { %3294 = vmatprep.mubr.bf16.mxu0 %v2855_v23  ;;  %3337 = vmatprep.mubr.bf16.mxu1 %v2855_v23  ;;  %v4915_v23 = vld [vmem:[#allocation12 + $0x194] ss:$8 sps:$4 sm:$0xff]  }
 0x7c0   : > { %3295 = vmatmul.mubr.bf16.vlgmr.msra.gmra.mxu0 %v2854_v14  ;;  %3338 = vmatmul.mubr.bf16.vlgmr.msra.gmra.mxu1 %v2854_v14  ;;  %v4910_v14 = vld [vmem:[#allocation12 + $0x90] ss:$8 sps:$4 sm:$0xff]  }
 0x7c1   : > { %3821 = vmatpush1.bf16.msra.mxu0 %v4826_v0  ;;  %3864 = vmatpush1.bf16.msra.mxu1 %v4829_v15  ;;  %v4913_v0 = vld [vmem:[#allocation12 + $0x190] ss:$8 sps:$4 sm:$0xff]   ;;  %v4918_v15 = vld [vmem:[#allocation12 + $0x84] ss:$8 sps:$4 sm:$0xff]  }
 0x7c2   : > { %3822 = vmatprep.subr.bf16.mxu0 %v4834_v20  ;;  %3865 = vmatprep.subr.bf16.mxu1 %v4837_v57  ;;  %v4921_v20 = vld [vmem:[#allocation12 + $0x184] ss:$8 sps:$4 sm:$0xff]   ;;  %v4916_v57 = vld [vmem:[#allocation12 + $0x80] ss:$8 sps:$4 sm:$0xff]  }
 0x7c5   : > { %3823 = vmatpush1.bf16.msra.mxu0 %v4832_v6  ;;  %3866 = vmatpush1.bf16.msra.mxu1 %v4835_v16  ;;  %v4919_v6 = vld [vmem:[#allocation12 + $0x180] ss:$8 sps:$4 sm:$0xff]   ;;  %v2932_v16 = vsub.s32 2, %v5550_v51 }
 0x7c6   : > { %3824 = vmatprep.subr.bf16.mxu0 %v4840_v21  ;;  %3867 = vmatprep.subr.bf16.mxu1 %v4843_v48  ;;  %v2920_v21 = vld [vmem:[%s5908_s5] sm:$0xf]  ;;  %v2936_v48 = vsub.s32 3, %v5550_v51 }
 0x7c9   : > { %3825 = vmatpush1.bf16.msra.mxu0 %v4838_v22  ;;  %3868 = vmatpush1.bf16.msra.mxu1 %v4841_v47  ;;  %v2925_v22 = vrot.slane %v2920_v21, %v5553_v53  ;;  %v2933_v47 = vrot.slane %v2920_v21, %v2932_v16 }
 0x7ca   : > { %3826 = vmatprep.subr.bf16.mxu0 %v4846_v24  ;;  %3869 = vmatprep.subr.bf16.mxu1 %v4849_v25  ;;  %v2929_v24 = vrot.slane %v2920_v21, %v5556_v54  ;;  %v2937_v25 = vrot.slane %v2920_v21, %v2936_v48 }
 0x7cd   : > { %3827 = vmatpush1.bf16.msra.mxu0 %v4844_v26  ;;  %3870 = vmatpush1.bf16.msra.mxu1 %v4847_v63 }
 0x7ce   : > { %3828 = vmatprep.subr.bf16.mxu0 %v4852_v60  ;;  %3871 = vmatprep.subr.bf16.mxu1 %v4855_v43 }
 0x7d1   : > { %3829 = vmatpush1.bf16.msra.mxu0 %v4850_v62  ;;  %3872 = vmatpush1.bf16.msra.mxu1 %v4853_v27 }
 0x7d2   : > { %3830 = vmatprep.subr.bf16.mxu0 %v4858_v59  ;;  %3873 = vmatprep.subr.bf16.mxu1 %v4861_v12 }
 0x7d5   : > { %3831 = vmatpush1.bf16.msra.mxu0 %v4856_v18  ;;  %3874 = vmatpush1.bf16.msra.mxu1 %v4859_v19 }
 0x7d6   : > { %3832 = vmatprep.subr.bf16.mxu0 %v4864_v2  ;;  %3875 = vmatprep.subr.bf16.mxu1 %v4867_v28 }
 0x7d9   : > { %3833 = vmatpush1.bf16.msra.mxu0 %v4862_v30  ;;  %3876 = vmatpush1.bf16.msra.mxu1 %v4865_v61 }
 0x7da   : > { %3834 = vmatprep.subr.bf16.mxu0 %v4870_v31  ;;  %3877 = vmatprep.subr.bf16.mxu1 %v4873_v32 }
 0x7dd   : > { %3835 = vmatpush1.bf16.msra.mxu0 %v4868_v33  ;;  %3878 = vmatpush1.bf16.msra.mxu1 %v4871_v34 }
 0x7de   : > { %3836 = vmatprep.subr.bf16.mxu0 %v4876_v35  ;;  %3879 = vmatprep.subr.bf16.mxu1 %v4879_v36 }
 0x7e1   : > { %3837 = vmatpush2.bf16.msra.mxu0 %v4874_v37  ;;  %3880 = vmatpush2.bf16.msra.mxu1 %v4877_v38 }
 0x7e2   : > { %3838 = vmatprep.subr.bf16.mxu0 %v4882_v39  ;;  %3881 = vmatprep.subr.bf16.mxu1 %v4885_v40 }
 0x7e5   : > { %3839 = vmatpush2.bf16.msra.mxu0 %v4880_v41  ;;  %3882 = vmatpush2.bf16.msra.mxu1 %v4883_v42 }
 0x7e6   : > { %3840 = vmatprep.subr.bf16.mxu0 %v4888_v44  ;;  %3883 = vmatprep.subr.bf16.mxu1 %v4891_v52 }
 0x7e9   : > { %3841 = vmatpush2.bf16.msra.mxu0 %v4886_v49  ;;  %3884 = vmatpush2.bf16.msra.mxu1 %v4889_v50 }
 0x7ea   : > { %3842 = vmatprep.subr.bf16.mxu0 %v4894_v55  ;;  %3885 = vmatprep.subr.bf16.mxu1 %v4897_v56 }
 0x7ed   : > { %3843 = vmatpush2.bf16.msra.mxu0 %v4892_v3  ;;  %3886 = vmatpush2.bf16.msra.mxu1 %v4895_v5 }
 0x7ee   : > { %3844 = vmatprep.subr.bf16.mxu0 %v4900_v29  ;;  %3887 = vmatprep.subr.bf16.mxu1 %v4903_v4 }
 0x7f1   : > { %3845 = vmatpush2.bf16.msra.mxu0 %v4898_v7  ;;  %3888 = vmatpush2.bf16.msra.mxu1 %v4901_v8 }
 0x7f2   : > { %3846 = vmatprep.subr.bf16.mxu0 %v4906_v9  ;;  %3889 = vmatprep.subr.bf16.mxu1 %v4909_v1 }
 0x7f5   : > { %3847 = vmatpush2.bf16.msra.mxu0 %v4904_v10  ;;  %3890 = vmatpush2.bf16.msra.mxu1 %v4907_v46 }
 0x7f6   : > { %3848 = vmatprep.subr.bf16.mxu0 %v4912_v45  ;;  %3891 = vmatprep.subr.bf16.mxu1 %v4915_v23 }
 0x7f9   : > { %3849 = vmatpush2.bf16.msra.mxu0 %v4910_v14  ;;  %3892 = vmatpush2.bf16.msra.mxu1 %v4913_v0 }
 0x7fa   : > { %3850 = vmatprep.subr.bf16.mxu0 %v4918_v15  ;;  %3893 = vmatprep.subr.bf16.mxu1 %v4921_v20 }
 0x7fd   : > { %3851 = vmatpush2.bf16.msra.mxu0 %v4916_v57  ;;  %3894 = vmatpush2.bf16.msra.mxu1 %v4919_v6 }
 0x880   : > { %v3296_v26 = vpop.f32.mrf.mxu0  ;;  %v3339_v63 = vpop.f32.mrf.mxu1 }
 0x881   : > { %v5810_v60 = vadd.f32 %v3296_v26, %v2925_v22  ;;  %v5812_v43 = vadd.f32 %v3339_v63, %v2933_v47 }
 0x882   : > { %v3298_v62 = vpop.f32.mrf.mxu0  ;;  %v3341_v27 = vpop.f32.mrf.mxu1 }
 0x883   : > { %v3356_v59 = vmul.f32 0.044715, %v5810_v60  ;;  %v3358_v12 = vmul.f32 0.044715, %v5812_v43  ;;  %v3299_v18 = vadd.f32 %v3298_v62, %v2929_v24  ;;  %v5816_v51 = vadd.f32 %v3341_v27, %v2937_v25 }
 0x884   : > { %v3300_v19 = vpop.f32.mrf.mxu0  ;;  %v3343_v2 = vpop.f32.mrf.mxu1 }
 0x885   : > { %v3364_v28 = vmul.f32 %v3356_v59, %v5810_v60  ;;  %v3366_v30 = vmul.f32 %v3358_v12, %v5812_v43  ;;  %v3357_v61 = vmul.f32 0.044715, %v3299_v18  ;;  %v3359_v31 = vmul.f32 0.044715, %v5816_v51 }
 0x886   : > { %v3301_v32 = vadd.f32 %v3300_v19, %v2925_v22  ;;  %v5821_v33 = vadd.f32 %v3343_v2, %v2933_v47  ;;  %v3302_v34 = vpop.f32.mrf.mxu0  ;;  %v3345_v35 = vpop.f32.mrf.mxu1  ;;  %v3349_v59 = vmul.f32 0.5, %v3299_v18  ;;  %v3348_v19 = vmul.f32 0.5, %v5810_v60 }
 0x887   : > { %v3372_v36 = vmul.f32 %v3364_v28, %v5810_v60  ;;  %v3374_v37 = vmul.f32 %v3366_v30, %v5812_v43  ;;  %v3365_v38 = vmul.f32 %v3357_v61, %v3299_v18  ;;  %v3367_v39 = vmul.f32 %v3359_v31, %v5816_v51 }
 0x888   : > { %v3360_v40 = vmul.f32 0.044715, %v3301_v32  ;;  %v3362_v41 = vmul.f32 0.044715, %v5821_v33  ;;  %v3303_v42 = vadd.f32 %v3302_v34, %v2929_v24  ;;  %v3346_v44 = vadd.f32 %v3345_v35, %v2937_v25 }
 0x889   : > { %v3380_v49 = vadd.f32 %v3372_v36, %v5810_v60  ;;  %v3382_v50 = vadd.f32 %v3374_v37, %v5812_v43  ;;  %v3373_v52 = vmul.f32 %v3365_v38, %v3299_v18  ;;  %v3375_v55 = vmul.f32 %v3367_v39, %v5816_v51 }
 0x88a   : > { %v3368_v56 = vmul.f32 %v3360_v40, %v3301_v32  ;;  %v3370_v3 = vmul.f32 %v3362_v41, %v5821_v33  ;;  %v3361_v5 = vmul.f32 0.044715, %v3303_v42  ;;  %v3363_v29 = vmul.f32 0.044715, %v3346_v44 }
 0x88b   : > { %v3388_v4 = vmul.f32 0.7978846, %v3380_v49  ;;  %v3390_v7 = vmul.f32 0.7978846, %v3382_v50  ;;  %v3381_v8 = vadd.f32 %v3373_v52, %v3299_v18  ;;  %v3383_v23 = vadd.f32 %v3375_v55, %v5816_v51 }
 0x88c   : > { %v3376_v9 = vmul.f32 %v3368_v56, %v3301_v32  ;;  %v3378_v1 = vmul.f32 %v3370_v3, %v5821_v33  ;;  %v3369_v10 = vmul.f32 %v3361_v5, %v3303_v42  ;;  %v3371_v46 = vmul.f32 %v3363_v29, %v3346_v44 }
 0x88d   : > { %v3389_v45 = vmul.f32 0.7978846, %v3381_v8  ;;  %4950 = vtanh.f32 %v3388_v4  ;;  %v3391_v57 = vmul.f32 0.7978846, %v3383_v23  ;;  %v3352_v61 = vmul.f32 0.5, %v3301_v32 }
 0x88e   : > { %v3384_v14 = vadd.f32 %v3376_v9, %v3301_v32  ;;  %v3386_v0 = vadd.f32 %v3378_v1, %v5821_v33  ;;  %v3377_v15 = vmul.f32 %v3369_v10, %v3303_v42  ;;  %4952 = vtanh.f32 %v3390_v7 }
 0x88f   : > { %v3379_v20 = vmul.f32 %v3371_v46, %v3346_v44  ;;  %4954 = vtanh.f32 %v3389_v45  ;;  %v3353_v36 = vmul.f32 0.5, %v3303_v42  ;;  %v3354_v38 = vmul.f32 0.5, %v5821_v33 }
 0x890   : > { %v3392_v6 = vmul.f32 0.7978846, %v3384_v14  ;;  %v3394_v16 = vmul.f32 0.7978846, %v3386_v0  ;;  %v3385_v21 = vadd.f32 %v3377_v15, %v3303_v42  ;;  %4956 = vtanh.f32 %v3391_v57 }
 0x891   : > { %v3387_v48 = vadd.f32 %v3379_v20, %v3346_v44  ;;  %v3351_v40 = vmul.f32 0.5, %v5816_v51  ;;  %v3355_v41 = vmul.f32 0.5, %v3346_v44  ;;  %v3350_v60 = vmul.f32 0.5, %v5812_v43  ;;  %v3488_v51 = vld [vmem:[%s5910_s7] sm:$0x3] }
 0x892   : > { %4958 = vtanh.f32 %v3392_v6  ;;  %v3393_v22 = vmul.f32 0.7978846, %v3385_v21  ;;  %v3493_v43 = vrot.slane %v3488_v51, %v5553_v53  ;;  %v3497_v44 = vrot.slane %v3488_v51, %v5556_v54 }
 0x893   : > { %4960 = vtanh.f32 %v3394_v16  ;;  %v3395_v47 = vmul.f32 0.7978846, %v3387_v48 }
 0x894   : > { %4962 = vtanh.f32 %v3393_v22 }
 0x895   : > { %4964 = vtanh.f32 %v3395_v47 }
 0x89a   : > { %v4951_v24 = vpop.eup %4950 }
 0x89b   : > { %v4953_v25 = vpop.eup %4952  ;;  %v3404_v31 = vadd.f32 1.0, %v4951_v24 }
 0x89c   : > { %v4955_v26 = vpop.eup %4954  ;;  %v3406_v39 = vadd.f32 1.0, %v4953_v25 }
 0x89d   : > { %v4957_v63 = vpop.eup %4956  ;;  %v3405_v12 = vadd.f32 1.0, %v4955_v26  ;;  %v3412_v3 = vmul.f32 %v3404_v31, %v3348_v19 }
 0x89e   : > { %v3407_v30 = vadd.f32 1.0, %v4957_v63  ;;  %v3414_v29 = vmul.f32 %v3406_v39, %v3350_v60 }
 0x89f   : > { %v4959_v62 = vpop.eup %4958  ;;  %v3413_v50 = vmul.f32 %v3405_v12, %v3349_v59 }
 0x8a0   : > { %v4961_v27 = vpop.eup %4960  ;;  %v3408_v2 = vadd.f32 1.0, %v4959_v62  ;;  %v3415_v56 = vmul.f32 %v3407_v30, %v3351_v40 }
 0x8a1   : > { %v4963_v28 = vpop.eup %4962  ;;  %v3410_v34 = vadd.f32 1.0, %v4961_v27 }
 0x8a2   : > { %v4965_v35 = vpop.eup %4964  ;;  %v3409_v37 = vadd.f32 1.0, %v4963_v28  ;;  %v3416_v18 = vmul.f32 %v3408_v2, %v3352_v61 }
 0x8a3   : > { %v3411_v49 = vadd.f32 1.0, %v4965_v35  ;;  %v3418_v55 = vmul.f32 %v3410_v34, %v3354_v38 }
 0x8a4   : > { %v3417_v52 = vmul.f32 %v3409_v37, %v3353_v36  ;;  %v3420_v4 = vpack.c.bf16 %v3416_v18, %v3412_v3 }
 0x8a5   : > { %v3419_v32 = vmul.f32 %v3411_v49, %v3355_v41  ;;  %v3422_v33 = vpack.c.bf16 %v3418_v55, %v3414_v29 }
 0x8a6   : > { %v3421_v5 = vpack.c.bf16 %v3417_v52, %v3413_v50 }
 0x8a7   : > { %v3423_v42 = vpack.c.bf16 %v3419_v32, %v3415_v56 }
 0x8a8   : > { %3852 = vmatprep.mubr.bf16.mxu0 %v3421_v5 }
 0x8a9   : > { %3895 = vmatprep.mubr.bf16.mxu1 %v3423_v42  ;;  %3853 = vmatmul.mubr.bf16.vlgmr.msra.gmra.mxu0 %v3420_v4 }
 0x8aa   : > { %3896 = vmatmul.mubr.bf16.vlgmr.msra.gmra.mxu1 %v3422_v33 }
 0x969   : > { %v3854_v7 = vpop.f32.mrf.mxu0 }
 0x96a   : > { %v3855_v8 = vadd.f32 %v3854_v7, %v3493_v43  ;;  %v3897_v9 = vpop.f32.mrf.mxu1 }
 0x96b   : > { %v3856_v1 = vpop.f32.mrf.mxu0 }
 0x96c   : > { %v3898_v10 = vadd.f32 %v3897_v9, %v3855_v8  ;;  %v3857_v46 = vadd.f32 %v3856_v1, %v3497_v44  ;;  %v3899_v45 = vpop.f32.mrf.mxu1 }
 0x96d   : > { %v3858_v23 = vpop.f32.mrf.mxu0 }
 0x96e   : > { %v3906_v14 = vadd.f32 %v3898_v10, %v5754_v11  ;;  %v3900_v0 = vadd.f32 %v3899_v45, %v3857_v46  ;;  %v3859_v15 = vadd.f32 %v3858_v23, %v3493_v43  ;;  %v3901_v20 = vpop.f32.mrf.mxu1 }
 0x96f   : > { %v3860_v53 = vpop.f32.mrf.mxu0 }
 0x970   : > { %3910 = vst [vmem:[%s518_s25] sm:$0xff] %v3906_v14  ;;  %v3907_v54 = vadd.f32 %v3900_v0, %v5757_v13  ;;  %v3902_v57 = vadd.f32 %v3901_v20, %v3859_v15  ;;  %v3861_v6 = vadd.f32 %v3860_v53, %v3497_v44  ;;  %v3903_v16 = vpop.f32.mrf.mxu1 }
 0x972   : > { %3911 = vst [vmem:[%s518_s25 + $0x8] sm:$0xff] %v3907_v54  ;;  %v3908_v11 = vadd.f32 %v3902_v57, %v5762_v17  ;;  %v3904_v21 = vadd.f32 %v3903_v16, %v3861_v6 }
 0x974   : > { %3912 = vst [vmem:[%s518_s25 + $0x10] sm:$0xff] %v3908_v11  ;;  %v3909_v13 = vadd.f32 %v3904_v21, %v5765_v58 }
 0x976   : > { %3913 = vst [vmem:[%s518_s25 + $0x18] sm:$0xff] %v3909_v13 }
 0x977   : > { %5141 = shalt.err (!%p5138_p7)
}
 0x978   : > { %s5142_s20 = scalar_lea.hbm %s5854_s19, 512  ;;  %s5146_s3 = scalar_lea.hbm %s5954_s29, 1024 }
 0x979   : > { %p5143_p4 = scmp.ne.s32.totalorder %s5854_s19, %s5142_s20  ;;  %p5147_p11 = scmp.lt.s32.totalorder %s5854_s19, %s5954_s29 }
 0x97a   : > { %p5148_p12 = scmp.lt.s32.totalorder %s5146_s3, %s5142_s20 }
 0x97b   : > { %p5144_p9 = pnand %p5143_p4, %p5955_p3 }
 0x97c   : > { %p5149_p0 = por %p5148_p12, %p5147_p11 }
 0x97d   : > { %p5145_p8 = pneg %p5144_p9 }
 0x97f   : > { %p5150_p1 = pnand %p5149_p0, %p5145_p8 }
 0x981   : > { %5153 = shalt.err (!%p5150_p1)
}
 0x982   : > { %s5238_s6 = smov 256   ;;  %s5239_s28 = smov 16  }
 0x983   : > { %4436 = dma.vmem_to_hbm [thread:$0]  (%p5955_p3), %s5848_s13, 512, %s5854_s19, %s3915_s24, %s5238_s6, %s5238_s6, %s5239_s28  }
 0x984 PF: > { %s3946_s27 = sand.u32 1, %s5200_s21   ;;  %p5956_p5 = scmp.ne.s32.totalorder %s5949_s18, 0 }
 0x985   : > { %p5957_p10 = scmp.ge.s32.totalorder %s5220_s26, 2  ;;  %s3947_s15 = scalar_lea.sflag [#allocation5], %s3946_s27 }
 0x987   : > { %p4459_p6 = pnand %p5957_p10, %p5956_p5 }
 0x989   : > { %p4460_p13 = pneg %p4459_p6 }
 0x98b   : > { %5195 = dma.done.wait (%p4460_p13), %s3947_s15, 512  }
 0x98c   : > { %5197 = vsyncadd (%p4460_p13), %s3947_s15, 4294966784  ;;  %s31_s26 = sadd.s32 1, %s5220_s26   ;;  %s5958_s24 = sld [smem:[#allocation21_spill]] }
 0x98d   : > { %p28_p2 = scmp.ge.s32.totalorder %s31_s26, 4   ;;  %s5959_s25 = sld [smem:[#allocation22_spill]] }
 0x98e   : > { %s5960_s21 = smov %s5204_s22  ;;  %s5961_s22 = smov %s5208_s23 }
 0x98f   : > { %s5962_s23 = smov %s5443_s17  ;;  %30 = sbr.rel (!%p28_p2) target bundleno = 16 (0x10), region = 138 }
 0x994   :  { %3952 = vsyncpa [#allocation4], 1 }
 0x995   :  { %3954 = vsyncpa [#allocation4 + $0x1], 1 }
 0x996   :  { %3955 = vsyncpa [#allocation7], 1 }
 0x997   :  { %3956 = vsyncpa [#allocation10], 1 }
 0x998   :  { %3957 = vsyncpa [#allocation13], 1 }
 0x999   :  { %3958 = vsyncpa [#allocation5], 1 }
 0x99a   :  { %3960 = vsyncpa [#allocation5 + $0x1], 1 }

</bundles_post_ra>
